<compile_context>
chip_gen: v6e
topology: v6e:2x2x1
jax: 0.10.0
libtpu: 0.0.40
codegen_flags: <defaults>
</compile_context>

<pallas_src>
import functools

import jax
import jax.numpy as jnp
from jax.experimental import pallas as pl
from jax.experimental.pallas import tpu as pltpu


def _ln_modulate_mix(residual, shift, scale, gate, nw, nb, wmix, bmix, eps):
    """LN -> modulate -> mixer -> gated residual add on one (TILE_L, D) tile.

    `residual` is f32; `wmix` is bf16 (f32 accumulation on the MXU)."""
    mean = jnp.mean(residual, axis=-1, keepdims=True)
    cent = residual - mean
    var = jnp.mean(cent * cent, axis=-1, keepdims=True)
    xn = cent * jax.lax.rsqrt(var + eps)
    xn = xn * nw + nb                                   # affine LN
    xm = xn * (1.0 + scale) + shift                     # modulate_fused
    mix = jnp.dot(xm.astype(jnp.bfloat16), wmix,
                  preferred_element_type=jnp.float32) + bmix
    # bias_dropout_add_scale (inference): residual + gate * mixer_out
    return residual + gate * mix


def block_kernel(h_ref, r_ref, shift_ref, scale_ref, gate_ref,
                 nw_ref, nb_ref, wmix_ref, bmix_ref,
                 out_ref, res_ref, *, eps):
    residual = h_ref[0].astype(jnp.float32) + r_ref[0].astype(jnp.float32)
    res_ref[0] = residual.astype(res_ref.dtype)
    out = _ln_modulate_mix(residual,
                           shift_ref[0], scale_ref[0], gate_ref[0],
                           nw_ref[...], nb_ref[...],
                           wmix_ref[...], bmix_ref[...], eps)
    out_ref[0] = out.astype(out_ref.dtype)


def block_kernel_no_res(h_ref, shift_ref, scale_ref, gate_ref,
                        nw_ref, nb_ref, wmix_ref, bmix_ref,
                        out_ref, res_ref, *, eps):
    residual = h_ref[0].astype(jnp.float32)
    res_ref[0] = residual.astype(res_ref.dtype)
    out = _ln_modulate_mix(residual,
                           shift_ref[0], scale_ref[0], gate_ref[0],
                           nw_ref[...], nb_ref[...],
                           wmix_ref[...], bmix_ref[...], eps)
    out_ref[0] = out.astype(out_ref.dtype)


def _pick_tile_l(L, cap=256):
    """Largest multiple-of-8 divisor of L that is <= cap (falls back to L)."""
    for t in range(min(L, cap), 0, -1):
        if L % t == 0 and t % 8 == 0:
            return t
    return L


def dimamba_block(hidden_states, residual, time_embeds, params, *,
                  eps=1e-5, tile_l=None):
    B, L, D = hidden_states.shape
    if tile_l is None:
        tile_l = _pick_tile_l(L)
    assert L % tile_l == 0
    n_l = L // tile_l

    # adaLN modulation hoisted out of the kernel: tiny (B,T)x(T,3D) matmul.
    mod = (time_embeds.astype(jnp.float32) @ params["ada_w"].T.astype(jnp.float32)
           + params["ada_b"].astype(jnp.float32))                    # (B, 3D)
    shift, scale, gate = jnp.split(mod, 3, axis=-1)                  # (B, D) each
    shift = shift.reshape(B, 1, D)
    scale = scale.reshape(B, 1, D)
    gate = gate.reshape(B, 1, D)

    nw = params["norm_w"].reshape(1, D).astype(jnp.float32)
    nb = params["norm_b"].reshape(1, D).astype(jnp.float32)
    wmix = params["mix_w"].T.astype(jnp.bfloat16)   # (D, D) bf16 for the MXU
    bmix = params["mix_b"].reshape(1, D).astype(jnp.float32)

    seq_spec = pl.BlockSpec((1, tile_l, D), lambda b, l: (b, l, 0))
    per_b = pl.BlockSpec((1, 1, D), lambda b, l: (b, 0, 0))
    bcast = pl.BlockSpec((1, D), lambda b, l: (0, 0))
    wspec = pl.BlockSpec((D, D), lambda b, l: (0, 0))

    common_specs = [per_b, per_b, per_b, bcast, bcast, wspec, bcast]
    out_shapes = (jax.ShapeDtypeStruct((B, L, D), hidden_states.dtype),
                  jax.ShapeDtypeStruct((B, L, D), hidden_states.dtype))
    cparams = pltpu.CompilerParams(
        dimension_semantics=("parallel", "parallel"))

    if residual is None:
        kernel = functools.partial(block_kernel_no_res, eps=eps)
        in_specs = [seq_spec] + common_specs
        args = (hidden_states, shift, scale, gate, nw, nb, wmix, bmix)
    else:
        kernel = functools.partial(block_kernel, eps=eps)
        in_specs = [seq_spec, seq_spec] + common_specs
        args = (hidden_states, residual, shift, scale, gate, nw, nb, wmix, bmix)

    grid_spec = pltpu.PrefetchScalarGridSpec(
        num_scalar_prefetch=0,
        grid=(B, n_l),
        in_specs=in_specs,
        out_specs=[seq_spec, seq_spec],
    )
    return pl.pallas_call(
        kernel,
        out_shape=out_shapes,
        grid_spec=grid_spec,
        compiler_params=cparams,
    )(*args)


def dimamba_block_ref(h, r, te, params, eps=1e-5):
    """Pure-JAX reference mirroring the PyTorch Block forward (f32 math)."""
    residual = (h + r) if r is not None else h
    residual = residual.astype(jnp.float32)
    mean = jnp.mean(residual, axis=-1, keepdims=True)
    var = jnp.mean((residual - mean) ** 2, axis=-1, keepdims=True)
    xn = (residual - mean) / jnp.sqrt(var + eps)
    xn = xn * params["norm_w"] + params["norm_b"]
    mod = te @ params["ada_w"].T + params["ada_b"]                  # (B, 3D)
    shift, scale, gate = jnp.split(mod[:, None, :], 3, axis=-1)     # (B,1,D) each
    xm = xn * (1.0 + scale) + shift
    mix = xm @ params["mix_w"].T + params["mix_b"]
    out = residual + gate * mix
    return out, residual


if __name__ == "__main__":
    # Small-but-lane-dense shapes: D=128 keeps every block's last dim a full
    # 128-lane vreg; L=512 with TILE_L=256 exercises the 2-D (B, L-tile) grid.
    B, L, D, T = 2, 512, 128, 16

    key = jax.random.PRNGKey(0)
    k_h, k_r, k_te, k_aw, k_ab, k_mw, k_mb = jax.random.split(key, 7)

    hidden_states = jax.random.normal(k_h, (B, L, D), jnp.float32)
    residual = jax.random.normal(k_r, (B, L, D), jnp.float32)
    time_embeds = jax.random.normal(k_te, (B, T), jnp.float32)

    # Deterministic synthetic parameters. Shapes follow the module's __init__
    # (norm: LayerNorm(dim); adaLN_modulation: Linear(t_dim, 3*dim); mixer(dim)).
    # The module zero-inits adaLN; small random values are used so the
    # modulation / gating path is actually exercised.
    params = {
        "norm_w": jnp.ones((D,), jnp.float32),
        "norm_b": jnp.zeros((D,), jnp.float32),
        "ada_w": 0.05 * jax.random.normal(k_aw, (3 * D, T), jnp.float32),
        "ada_b": 0.05 * jax.random.normal(k_ab, (3 * D,), jnp.float32),
        "mix_w": 0.1 * jax.random.normal(k_mw, (D, D), jnp.float32),
        "mix_b": 0.1 * jax.random.normal(k_mb, (D,), jnp.float32),
    }

    # Path 1: with residual.
    out, res = dimamba_block(hidden_states, residual, time_embeds, params)
    out = jax.block_until_ready(out)
    res = jax.block_until_ready(res)
    out_r, res_r = dimamba_block_ref(hidden_states, residual, time_embeds, params)
    assert out.shape == (B, L, D) and res.shape == (B, L, D)
    assert jnp.allclose(res, res_r, atol=2e-2, rtol=2e-2)
    assert jnp.allclose(out, out_r, atol=2e-2, rtol=2e-2)

    # Path 2: residual=None (first block) — no zero tensor streamed from HBM.
    out2, res2 = dimamba_block(hidden_states, None, time_embeds, params)
    out2 = jax.block_until_ready(out2)
    res2 = jax.block_until_ready(res2)
    out2_r, res2_r = dimamba_block_ref(hidden_states, None, time_embeds, params)
    assert jnp.allclose(res2, res2_r, atol=2e-2, rtol=2e-2)
    assert jnp.allclose(out2, out2_r, atol=2e-2, rtol=2e-2)

    print("KERNEL_OK")
</pallas_src>

<mosaic_0001>
module attributes {stable_mosaic.version = 11 : i64} {
  func.func @block_kernel(%arg0: i32, %arg1: i32, %arg2: memref<1x256x128xf32, #tpu.memory_space<vmem>>, %arg3: memref<1x256x128xf32, #tpu.memory_space<vmem>>, %arg4: memref<1x1x128xf32, #tpu.memory_space<vmem>>, %arg5: memref<1x1x128xf32, #tpu.memory_space<vmem>>, %arg6: memref<1x1x128xf32, #tpu.memory_space<vmem>>, %arg7: memref<1x128xf32, #tpu.memory_space<vmem>>, %arg8: memref<1x128xf32, #tpu.memory_space<vmem>>, %arg9: memref<128x128xbf16, #tpu.memory_space<vmem>>, %arg10: memref<1x128xf32, #tpu.memory_space<vmem>>, %arg11: memref<1x256x128xf32, #tpu.memory_space<vmem>>, %arg12: memref<1x256x128xf32, #tpu.memory_space<vmem>>) attributes {dimension_semantics = [#tpu.dimension_semantics<parallel>, #tpu.dimension_semantics<parallel>], iteration_bounds = array<i64: 2, 2>, scalar_prefetch = 0 : i64, scratch_operands = 0 : i64, tpu.core_type = #tpu.core_type<tc>, window_params = [{transform_indices = @transform_0, window_bounds = array<i64: 1, 256, 128>}, {transform_indices = @transform_1, window_bounds = array<i64: 1, 256, 128>}, {transform_indices = @transform_2, window_bounds = array<i64: 1, 1, 128>}, {transform_indices = @transform_3, window_bounds = array<i64: 1, 1, 128>}, {transform_indices = @transform_4, window_bounds = array<i64: 1, 1, 128>}, {pipeline_mode = #tpu.pipeline_mode<synchronous>, transform_indices = @transform_5, window_bounds = array<i64: 1, 128>}, {pipeline_mode = #tpu.pipeline_mode<synchronous>, transform_indices = @transform_6, window_bounds = array<i64: 1, 128>}, {pipeline_mode = #tpu.pipeline_mode<synchronous>, transform_indices = @transform_7, window_bounds = array<i64: 128, 128>}, {pipeline_mode = #tpu.pipeline_mode<synchronous>, transform_indices = @transform_8, window_bounds = array<i64: 1, 128>}, {transform_indices = @transform_9, window_bounds = array<i64: 1, 256, 128>}, {transform_indices = @transform_10, window_bounds = array<i64: 1, 256, 128>}]} {
    %c0 = arith.constant 0 : index
    %c0_0 = arith.constant 0 : index
    %c0_1 = arith.constant 0 : index
    %0 = vector.load %arg2[%c0, %c0_0, %c0_1] : memref<1x256x128xf32, #tpu.memory_space<vmem>>, vector<1x256x128xf32>
    %1 = vector.shape_cast %0 : vector<1x256x128xf32> to vector<256x128xf32>
    %c0_2 = arith.constant 0 : index
    %c0_3 = arith.constant 0 : index
    %c0_4 = arith.constant 0 : index
    %2 = vector.load %arg3[%c0_2, %c0_3, %c0_4] : memref<1x256x128xf32, #tpu.memory_space<vmem>>, vector<1x256x128xf32>
    %3 = vector.shape_cast %2 : vector<1x256x128xf32> to vector<256x128xf32>
    %4 = arith.addf %1, %3 : vector<256x128xf32>
    %c0_5 = arith.constant 0 : index
    %c0_6 = arith.constant 0 : index
    %c0_7 = arith.constant 0 : index
    %5 = vector.load %arg12[%c0_5, %c0_6, %c0_7] : memref<1x256x128xf32, #tpu.memory_space<vmem>>, vector<1x256x128xf32>
    %6 = vector.shape_cast %5 : vector<1x256x128xf32> to vector<256x128xf32>
    %7 = vector.shape_cast %4 : vector<256x128xf32> to vector<1x256x128xf32>
    tpu.vector_store %arg12[%c0_5, %c0_6, %c0_7], %7 {strides = array<i32>} : memref<1x256x128xf32, #tpu.memory_space<vmem>>, vector<1x256x128xf32>,
    %c0_8 = arith.constant 0 : index
    %c0_9 = arith.constant 0 : index
    %c0_10 = arith.constant 0 : index
    %8 = vector.load %arg4[%c0_8, %c0_9, %c0_10] : memref<1x1x128xf32, #tpu.memory_space<vmem>>, vector<1x1x128xf32>
    %9 = vector.shape_cast %8 : vector<1x1x128xf32> to vector<1x128xf32>
    %c0_11 = arith.constant 0 : index
    %c0_12 = arith.constant 0 : index
    %c0_13 = arith.constant 0 : index
    %10 = vector.load %arg5[%c0_11, %c0_12, %c0_13] : memref<1x1x128xf32, #tpu.memory_space<vmem>>, vector<1x1x128xf32>
    %11 = vector.shape_cast %10 : vector<1x1x128xf32> to vector<1x128xf32>
    %c0_14 = arith.constant 0 : index
    %c0_15 = arith.constant 0 : index
    %c0_16 = arith.constant 0 : index
    %12 = vector.load %arg6[%c0_14, %c0_15, %c0_16] : memref<1x1x128xf32, #tpu.memory_space<vmem>>, vector<1x1x128xf32>
    %13 = vector.shape_cast %12 : vector<1x1x128xf32> to vector<1x128xf32>
    %c0_17 = arith.constant 0 : index
    %c0_18 = arith.constant 0 : index
    %14 = vector.load %arg7[%c0_17, %c0_18] : memref<1x128xf32, #tpu.memory_space<vmem>>, vector<1x128xf32>
    %c0_19 = arith.constant 0 : index
    %c0_20 = arith.constant 0 : index
    %15 = vector.load %arg8[%c0_19, %c0_20] : memref<1x128xf32, #tpu.memory_space<vmem>>, vector<1x128xf32>
    %c0_21 = arith.constant 0 : index
    %c0_22 = arith.constant 0 : index
    %16 = vector.load %arg9[%c0_21, %c0_22] : memref<128x128xbf16, #tpu.memory_space<vmem>>, vector<128x128xbf16>
    %c0_23 = arith.constant 0 : index
    %c0_24 = arith.constant 0 : index
    %17 = vector.load %arg10[%c0_23, %c0_24] : memref<1x128xf32, #tpu.memory_space<vmem>>, vector<1x128xf32>
    %cst = arith.constant dense<0.000000e+00> : vector<256xf32>
    %18 = vector.multi_reduction <add>, %4, %cst [1] : vector<256x128xf32> to vector<256xf32>
    %19 = vector.shape_cast %18 : vector<256xf32> to vector<256x1xf32>
    %cst_25 = arith.constant 1.280000e+02 : f32
    %20 = vector.broadcast %cst_25 : f32 to vector<256x1xf32>
    %21 = arith.divf %19, %20 : vector<256x1xf32>
    %22 = vector.broadcast %21 : vector<256x1xf32> to vector<256x128xf32>
    %23 = arith.subf %4, %22 : vector<256x128xf32>
    %24 = arith.mulf %23, %23 : vector<256x128xf32>
    %cst_26 = arith.constant dense<0.000000e+00> : vector<256xf32>
    %25 = vector.multi_reduction <add>, %24, %cst_26 [1] : vector<256x128xf32> to vector<256xf32>
    %26 = vector.shape_cast %25 : vector<256xf32> to vector<256x1xf32>
    %cst_27 = arith.constant 1.280000e+02 : f32
    %27 = vector.broadcast %cst_27 : f32 to vector<256x1xf32>
    %28 = arith.divf %26, %27 : vector<256x1xf32>
    %cst_28 = arith.constant 9.99999974E-6 : f32
    %29 = vector.broadcast %cst_28 : f32 to vector<256x1xf32>
    %30 = arith.addf %28, %29 : vector<256x1xf32>
    %31 = math.rsqrt %30 : vector<256x1xf32>
    %32 = vector.broadcast %31 : vector<256x1xf32> to vector<256x128xf32>
    %33 = arith.mulf %23, %32 : vector<256x128xf32>
    %34 = vector.broadcast %14 : vector<1x128xf32> to vector<256x128xf32>
    %35 = arith.mulf %33, %34 : vector<256x128xf32>
    %36 = vector.broadcast %15 : vector<1x128xf32> to vector<256x128xf32>
    %37 = arith.addf %35, %36 : vector<256x128xf32>
    %cst_29 = arith.constant 1.000000e+00 : f32
    %38 = vector.broadcast %cst_29 : f32 to vector<1x128xf32>
    %39 = arith.addf %38, %11 : vector<1x128xf32>
    %40 = vector.broadcast %39 : vector<1x128xf32> to vector<256x128xf32>
    %41 = arith.mulf %37, %40 : vector<256x128xf32>
    %42 = vector.broadcast %9 : vector<1x128xf32> to vector<256x128xf32>
    %43 = arith.addf %41, %42 : vector<256x128xf32>
    %44 = arith.truncf %43 : vector<256x128xf32> to vector<256x128xbf16>
    %cst_30 = arith.constant dense<0.000000e+00> : vector<256x128xf32>
    %45 = tpu.matmul %44, %16, %cst_30 {dimension_numbers = #tpu.dot_dimension_numbers<[1], [0], [0], [1], [0, 0, 1, 1], [], []>} : vector<256x128xbf16>, vector<128x128xbf16>, vector<256x128xf32> -> vector<256x128xf32>
    %46 = vector.broadcast %17 : vector<1x128xf32> to vector<256x128xf32>
    %47 = arith.addf %45, %46 : vector<256x128xf32>
    %48 = vector.broadcast %13 : vector<1x128xf32> to vector<256x128xf32>
    %49 = arith.mulf %48, %47 : vector<256x128xf32>
    %50 = arith.addf %4, %49 : vector<256x128xf32>
    %c0_31 = arith.constant 0 : index
    %c0_32 = arith.constant 0 : index
    %c0_33 = arith.constant 0 : index
    %51 = vector.load %arg11[%c0_31, %c0_32, %c0_33] : memref<1x256x128xf32, #tpu.memory_space<vmem>>, vector<1x256x128xf32>
    %52 = vector.shape_cast %51 : vector<1x256x128xf32> to vector<256x128xf32>
    %53 = vector.shape_cast %50 : vector<256x128xf32> to vector<1x256x128xf32>
    tpu.vector_store %arg11[%c0_31, %c0_32, %c0_33], %53 {strides = array<i32>} : memref<1x256x128xf32, #tpu.memory_space<vmem>>, vector<1x256x128xf32>,
    return
  }
  func.func @transform_0(%arg0: i32, %arg1: i32) -> (i32, i32, i32) {
    %c0_i32 = arith.constant 0 : i32
    %c0_i32_0 = arith.constant 0 : i32
    return %arg0, %arg1, %c0_i32 : i32, i32, i32
  }
  func.func @transform_1(%arg0: i32, %arg1: i32) -> (i32, i32, i32) {
    %c0_i32 = arith.constant 0 : i32
    %c0_i32_0 = arith.constant 0 : i32
    return %arg0, %arg1, %c0_i32 : i32, i32, i32
  }
  func.func @transform_2(%arg0: i32, %arg1: i32) -> (i32, i32, i32) {
    %c0_i32 = arith.constant 0 : i32
    %c0_i32_0 = arith.constant 0 : i32
    %c0_i32_1 = arith.constant 0 : i32
    return %arg0, %c0_i32, %c0_i32_0 : i32, i32, i32
  }
  func.func @transform_3(%arg0: i32, %arg1: i32) -> (i32, i32, i32) {
    %c0_i32 = arith.constant 0 : i32
    %c0_i32_0 = arith.constant 0 : i32
    %c0_i32_1 = arith.constant 0 : i32
    return %arg0, %c0_i32, %c0_i32_0 : i32, i32, i32
  }
  func.func @transform_4(%arg0: i32, %arg1: i32) -> (i32, i32, i32) {
    %c0_i32 = arith.constant 0 : i32
    %c0_i32_0 = arith.constant 0 : i32
    %c0_i32_1 = arith.constant 0 : i32
    return %arg0, %c0_i32, %c0_i32_0 : i32, i32, i32
  }
  func.func @transform_5(%arg0: i32, %arg1: i32) -> (i32, i32) {
    %c0_i32 = arith.constant 0 : i32
    %c0_i32_0 = arith.constant 0 : i32
    %c0_i32_1 = arith.constant 0 : i32
    return %c0_i32, %c0_i32_0 : i32, i32
  }
  func.func @transform_6(%arg0: i32, %arg1: i32) -> (i32, i32) {
    %c0_i32 = arith.constant 0 : i32
    %c0_i32_0 = arith.constant 0 : i32
    %c0_i32_1 = arith.constant 0 : i32
    return %c0_i32, %c0_i32_0 : i32, i32
  }
  func.func @transform_7(%arg0: i32, %arg1: i32) -> (i32, i32) {
    %c0_i32 = arith.constant 0 : i32
    %c0_i32_0 = arith.constant 0 : i32
    %c0_i32_1 = arith.constant 0 : i32
    return %c0_i32, %c0_i32_0 : i32, i32
  }
  func.func @transform_8(%arg0: i32, %arg1: i32) -> (i32, i32) {
    %c0_i32 = arith.constant 0 : i32
    %c0_i32_0 = arith.constant 0 : i32
    %c0_i32_1 = arith.constant 0 : i32
    return %c0_i32, %c0_i32_0 : i32, i32
  }
  func.func @transform_9(%arg0: i32, %arg1: i32) -> (i32, i32, i32) {
    %c0_i32 = arith.constant 0 : i32
    %c0_i32_0 = arith.constant 0 : i32
    return %arg0, %arg1, %c0_i32 : i32, i32, i32
  }
  func.func @transform_10(%arg0: i32, %arg1: i32) -> (i32, i32, i32) {
    %c0_i32 = arith.constant 0 : i32
    %c0_i32_0 = arith.constant 0 : i32
    return %arg0, %arg1, %c0_i32 : i32, i32, i32
  }
}

</mosaic_0001>

<bundles_post_ra>
// kernel: tpu_custom_call.1
= control target key start
LH: loop header
LB: loop body
LE: loop exit
PB: predicated region body
PF: predicated region fallthrough
CT: control target
= control target key end

     0   :  { %s3300_s0 = inlined_call_operand.hbm [shape: f32[2,512,128], index: 0, kind: input, shape index: {}]   ;;  %s3301_s1 = inlined_call_operand.hbm [shape: f32[2,512,128], index: 1, kind: input, shape index: {}]   ;;  %s3302_s2 = inlined_call_operand.vmem [shape: f32[2,1,128], index: 2, kind: input, shape index: {}]   ;;  %s3303_s3 = inlined_call_operand.vmem [shape: f32[2,1,128], index: 3, kind: input, shape index: {}]   ;;  %s3304_s4 = inlined_call_operand.vmem [shape: f32[2,1,128], index: 4, kind: input, shape index: {}]   ;;  %s3305_s5 = inlined_call_operand.vmem [shape: f32[1,128], index: 5, kind: input, shape index: {}]   ;;  %s3306_s6 = inlined_call_operand.vmem [shape: f32[1,128], index: 6, kind: input, shape index: {}]   ;;  %s3307_s7 = inlined_call_operand.hbm [shape: bf16[128,128], index: 7, kind: input, shape index: {}]   ;;  %s3308_s8 = inlined_call_operand.vmem [shape: f32[1,128], index: 8, kind: input, shape index: {}]   ;;  %s3309_s9 = inlined_call_operand.hbm [shape: f32[2,512,128], index: 9, kind: output, shape index: {0}]   ;;  %s3310_s10 = inlined_call_operand.hbm [shape: f32[2,512,128], index: 10, kind: output, shape index: {1}]  }
   0x1   :  { %3343 = sst [smem:[#allocation47_spill]] %s3300_s0 }
   0x2   :  { %3344 = sst [smem:[#allocation48_spill]] %s3304_s4 }
   0x3   :  { %3345 = sst [smem:[#allocation49_spill]] %s3307_s7 }
   0x4   :  { %3346 = sst [smem:[#allocation50_spill]] %s3308_s8 }
   0x5   :  { %3347 = sst [smem:[#allocation51_spill]] %s3309_s9 }
   0x6   :  { %3348 = sst [smem:[#allocation52_spill]] %s3310_s10 }
   0x7   :  { %16 = vsyncpa [#allocation3], 0 }
   0x8   :  { %18 = vsyncpa [#allocation3 + $0x1], 0 }
   0x9   :  { %19 = vsyncpa [#allocation6], 0 }
   0xa   :  { %21 = vsyncpa [#allocation6 + $0x1], 0 }
   0xb   :  { %22 = vsyncpa [#allocation4], 0 }
   0xc   :  { %24 = vsyncpa [#allocation4 + $0x1], 0 }
   0xd   :  { %25 = vsyncpa [#allocation10], 0 }
   0xe   :  { %27 = vsyncpa [#allocation10 + $0x1], 0  ;;  %s2320_s13 = smov 0   ;;  %s2322_s14 = smov 0  }
   0xf   :  { %s2324_s15 = smov 0   ;;  %s2326_s16 = smov 0  }
  0x10   :  { %s2328_s17 = smov 0   ;;  %s2330_s18 = smov 0  }
  0x11   :  { %s2332_s19 = smov 0   ;;  %s2334_s20 = smov 0  }
  0x12 LB: > { %3349 = sst [smem:[#allocation16_spill]] %s2224_s13  ;;  %s2361_s21 = sadd.s32 4294967295, %s2252_s20   ;;  %s2252_s20 = sphi %s2334_s20, %s33_s20   ;;  %s2248_s19 = sphi %s2332_s19, %s3429_s19   ;;  %s2244_s18 = sphi %s2330_s18, %s3428_s18   ;;  %s2240_s17 = sphi %s2328_s17, %s3422_s17   ;;  %s2236_s16 = sphi %s2326_s16, %s3421_s16   ;;  %s2232_s15 = sphi %s2324_s15, %s3427_s15   ;;  %s2228_s14 = sphi %s2322_s14, %s3426_s14   ;;  %s2224_s13 = sphi %s2320_s13, %s3425_s13  }
  0x13   : > { %3350 = sst [smem:[#allocation17_spill]] %s2236_s16  ;;  %s1730_s22 = sadd.s32 4294967294, %s2252_s20  }
  0x14   : > { %3351 = sst [smem:[#allocation18_spill]] %s2244_s18  ;;  %p67_p0 = scmp.ne.s32.totalorder %s2228_s14, %s2224_s13 }
  0x15   : > { %3352 = sst [smem:[#allocation19_spill]] %s2248_s19  ;;  %p68_p1 = scmp.eq.s32.totalorder %s2361_s21, 0 }
  0x16   : > { %p289_p3 = scmp.eq.s32.totalorder %s1730_s22, 3  ;;  %p1731_p5 = scmp.ge.s32.totalorder %s2252_s20, 1 }
  0x17   : > { %p2370_p4 = por %p68_p1, %p67_p0  ;;  %p324_p7 = scmp.lt.s32.totalorder %s2252_s20, 5 }
  0x18   : > { %p2375_p6 = por %p289_p3, %p67_p0  ;;  %s2254_s26 = smov [#allocation7]  }
  0x19   : > { %p2380_p8 = pnand %p1731_p5, %p324_p7  ;;  %s342_s27 = sshll.u32 %s2254_s26, 4  ;;  %s343_s27 = int_to_ptr.vmem [resolvable:$true] %s342_s27 }
  0x1a   : > { %s3354_s24 = scalar_select %p2375_p6, 1, 0 }
  0x1b   : > { %p1871_p9 = pneg %p2380_p8  ;;  %s2047_s28 = scalar_lea.vmem %s343_s27, 1024 }
  0x1c   : > { %3355 = sst [smem:[#allocation20_spill]] %s3354_s24  ;;  %p2048_p12 = scmp.ne.s32.totalorder %s343_s27, %s2047_s28 }
  0x1d   : > { %p1872_p10 = pnand %p1871_p9, %p68_p1  ;;  %p2055_p3 = scmp.lt.s32.totalorder %s343_s27, %s343_s27 }
  0x1e   : > { %p2056_p2 = scmp.lt.s32.totalorder %s2047_s28, %s2047_s28 }
  0x1f   : > { %p2038_p11 = pneg %p1872_p10 }
  0x20   : > { %p2057_p6 = por %p2056_p2, %p2055_p3 }
  0x21   : > { %p2050_p13 = pnand %p2048_p12, %p2038_p11 }
  0x23   : > { %p2051_p0 = pneg %p2050_p13 }
  0x25   : > { %p2058_p5 = pnand %p2057_p6, %p2051_p0 }
  0x27   : > { %2061 = shalt.err (!%p2058_p5)
}
  0x28   : > { %s2255_s29 = smov 64   ;;  %s2256_s30 = smov 4  }
  0x29   : > { %s3357_s7 = sld [smem:[#allocation49_spill]]  ;;  %s42_s22 = sadd.s32 1, %s2244_s18 }
  0x2a   : > { %p43_p2 = scmp.ge.s32.totalorder %s42_s22, 2  ;;  %s45_s26 = sadd.s32 1, %s2248_s19 }
  0x2b   : > { %s54_s28 = sadd.s32 1, %s2232_s15  ;;  %p61_p6 = scmp.ne.s32.totalorder %s2232_s15, %s2228_s14 }
  0x2c   : > { %s3431_s22 = smov (%p43_p2, %s42_s22), 0  ;;  %s3433_s26 = smov (!%p43_p2, %s45_s26), %s2248_s19 }
  0x2d   : > { %3358 = sst [smem:[#allocation21_spill]] %s3431_s22  ;;  %s50_s24 = ssub.s32 %s2244_s18, %s3431_s22 }
  0x2e   : > { %p62_p7 = scmp.eq.s32.totalorder %s2252_s20, 0  ;;  %p47_p9 = scmp.ge.s32.totalorder %s3433_s26, 2 }
  0x2f   : > { %1874 = dma.hbm_to_vmem [thread:$0]  (!%p1872_p10), %s3357_s7, 1024, %s343_s27, [#allocation6], %s2255_s29, %s2255_s29, %s2256_s30  }
  0x30   : > { %p3359_p11 = scmp.eq.s32.totalorder %s2361_s21, 3  ;;  %p2408_p10 = por %p62_p7, %p61_p6 }
  0x31   : > { %p1890_p13 = scmp.lt.s32.totalorder %s2252_s20, 4  ;;  %s3435_s26 = smov (%p47_p9, %s3433_s26), 0 }
  0x32   : > { %p2404_p12 = por %p3359_p11, %p61_p6  ;;  %3363 = sst [smem:[#allocation23_spill]] %s3435_s26 }
  0x33   : > { %s359_s29 = sand.u32 1, %s2232_s15   ;;  %s1735_s30 = sshll.u32 %s2244_s18, 5 }
  0x34   : > { %s3360_s11 = scalar_select %p2404_p12, 1, 0 }
  0x35   : > { %s49_s12 = ssub.s32 %s2248_s19, %s3435_s26  ;;  %s2419_s22 = sshll.u32 %s359_s29, 8 }
  0x36   : > { %3361 = sst [smem:[#allocation22_spill]] %s3360_s11  ;;  %s51_s7 = sor.u32 %s50_s24, %s49_s12 }
  0x37   : > { %p52_p0 = scmp.eq.s32.totalorder %s51_s7, 0  ;;  %s1736_s13 = sshll.u32 %s2248_s19, 6 }
  0x38   : > { %s363_s9 = scalar_lea.vmem [#allocation2], %s2419_s22  ;;  %s369_s10 = sadd.s32 %s1736_s13, %s1735_s30 }
  0x39   : > { %s372_s8 = sshll.u32 %s363_s9, 4  ;;  %s1737_s11 = sshll.u32 %s369_s10, 7  ;;  %s373_s8 = int_to_ptr.vmem [resolvable:$true] %s372_s8 }
  0x3a   : > { %s2424_s4 = scalar_select %p52_p0, %s2232_s15, %s54_s28  }
  0x3b   : > { %p2430_p3 = pnand %p1890_p13, %p2408_p10  ;;  %s3366_s0 = sld [smem:[#allocation47_spill]] }
  0x3c   : > { %3364 = sst [smem:[#allocation24_spill]] %s2424_s4  ;;  %s360_s12 = scalar_lea.sflag [#allocation3], %s359_s29 }
  0x3d   : > { %p2064_p5 = pneg %p2430_p3  ;;  %s2075_s9 = scalar_lea.vmem %s373_s8, 4096 }
  0x3e   : > { %p2076_p2 = scmp.ne.s32.totalorder %s373_s8, %s2075_s9  ;;  %s2257_s10 = smov [#allocation2]  }
  0x3f   : > { %s2080_s13 = sshll.u32 %s2257_s10, 4  ;;  %s2081_s13 = int_to_ptr.vmem [resolvable:$false] %s2080_s13 }
  0x40   : > { %p2078_p6 = pnand %p2076_p2, %p2064_p5  ;;  %s2082_s28 = scalar_lea.vmem %s2081_s13, 8192 }
  0x41   : > { %s371_s7 = scalar_lea.hbm %s3366_s0, %s1737_s11  ;;  %p2083_p9 = scmp.lt.s32.totalorder %s373_s8, %s2081_s13 }
  0x42   : > { %p2079_p7 = pneg %p2078_p6  ;;  %p2084_p11 = scmp.lt.s32.totalorder %s2082_s28, %s2075_s9 }
  0x44   : > { %p2085_p10 = por %p2084_p11, %p2083_p9 }
  0x46   : > { %p2086_p13 = pnand %p2085_p10, %p2079_p7 }
  0x48   : > { %2089 = shalt.err (!%p2086_p13)
}
  0x49   : > { %s2258_s26 = smov 128   ;;  %s2259_s27 = smov 8  }
  0x4a   : > { %1878 = dma.hbm_to_vmem [thread:$0]  (!%p2430_p3), %s371_s7, 4096, %s373_s8, %s360_s12, %s2258_s26, %s2258_s26, %s2259_s27  }
  0x4b   : > { %s394_s24 = scalar_lea.hbm %s3301_s1, %s1737_s11  ;;  %s386_s10 = scalar_lea.vmem [#allocation5], %s2419_s22 }
  0x4c   : > { %s395_s0 = sshll.u32 %s386_s10, 4  ;;  %s382_s19 = sand.u32 1, %s2252_s20   ;;  %s396_s0 = int_to_ptr.vmem [resolvable:$true] %s395_s0 }
  0x4d   : > { %s383_s9 = scalar_lea.sflag [#allocation6], %s382_s19  ;;  %s2103_s13 = scalar_lea.vmem %s396_s0, 4096 }
  0x4e   : > { %p2104_p0 = scmp.ne.s32.totalorder %s396_s0, %s2103_s13  ;;  %s2260_s28 = smov [#allocation5]  }
  0x4f   : > { %s2108_s18 = sshll.u32 %s2260_s28, 4  ;;  %s2109_s18 = int_to_ptr.vmem [resolvable:$false] %s2108_s18 }
  0x50   : > { %p2106_p2 = pnand %p2104_p0, %p2064_p5  ;;  %s2110_s4 = scalar_lea.vmem %s2109_s18, 8192 }
  0x51   : > { %p2111_p7 = scmp.lt.s32.totalorder %s396_s0, %s2109_s18  ;;  %p2112_p9 = scmp.lt.s32.totalorder %s2110_s4, %s2103_s13 }
  0x52   : > { %p2107_p6 = pneg %p2106_p2 }
  0x53   : > { %p2113_p11 = por %p2112_p9, %p2111_p7 }
  0x55   : > { %p2114_p10 = pnand %p2113_p11, %p2107_p6 }
  0x57   : > { %2117 = shalt.err (!%p2114_p10)
}
  0x58   : > { %1881 = dma.hbm_to_vmem [thread:$0]  (!%p2430_p3), %s394_s24, 4096, %s396_s0, %s383_s9, %s2258_s26, %s2258_s26, %s2259_s27  }
  0x59   : > { %425 = sbr.rel (%p2380_p8) target bundleno = 701 (0x2bd), region = 56 }
  0x5e   : > { %s2457_s8 = sand.u32 1, %s2228_s14  }
  0x5f   : > { %s2460_s19 = sshll.u32 %s2457_s8, 8  ;;  %s428_s18 = scalar_lea.sflag [#allocation3], %s2457_s8 }
  0x60   : > { %s2464_s4 = scalar_lea.vmem [#allocation2], %s2460_s19 }
  0x61   : > { %2203 = dma.done.wait (%p2370_p4), %s428_s18, 4096  }
  0x62   : > { %2205 = vsyncadd (%p2370_p4), %s428_s18, 4294963200  ;;  %s436_s0 = sand.u32 1, %s2361_s21   ;;  %s2472_s25 = scalar_lea.vmem [#allocation5], %s2460_s19 }
  0x63   : > { %s437_s16 = scalar_lea.sflag [#allocation6], %s436_s0 }
  0x64   : > { %2207 = dma.done.wait (%p2370_p4), %s437_s16, 4096  }
  0x65   : > { %2209 = vsyncadd (%p2370_p4), %s437_s16, 4294963200 }
  0x66   : > { %2211 = dma.done.wait (%p68_p1), [#allocation6], 1024  }
  0x67   : > { %2213 = vsyncadd (%p68_p1), [#allocation6], 4294966272  ;;  %v514_v0 = vld [vmem:[%s2464_s4] sm:$0xff]  ;;  %v515_v5 = vld [vmem:[%s2464_s4 + $0x8] sm:$0xff]  ;;  %s2499_s21 = scalar_lea.vmem [#allocation9], %s2460_s19  ;;  %p502_p1 = scmp.lt.s32.totalorder %s2240_s17, 1 }
  0x68   : > { %v546_v1 = vld [vmem:[%s2472_s25] sm:$0xff]  ;;  %v547_v6 = vld [vmem:[%s2472_s25 + $0x8] sm:$0xff]  ;;  %v516_v11 = vld [vmem:[%s2464_s4 + $0x10] sm:$0xff]  ;;  %s3389_s9 = sld [smem:[#allocation17_spill]]  ;;  %s1764_s18 = sshll.u32 %s2240_s17, 6 }
  0x69   : > { %v530_v2 = vld [vmem:[%s2464_s4 + $0x80] sm:$0xff]  ;;  %v2485_v3 = vadd.f32 %v546_v1, %v514_v0  ;;  %v2492_v8 = vadd.f32 %v547_v6, %v515_v5  ;;  %v531_v9 = vld [vmem:[%s2464_s4 + $0x88] sm:$0xff]  ;;  %v548_v13 = vld [vmem:[%s2472_s25 + $0x10] sm:$0xff]  ;;  %s2871_s23 = scalar_select %p502_p1, %s2240_s17, 1 }
  0x6a   : > { %v562_v4 = vld [vmem:[%s2472_s25 + $0x80] sm:$0xff]  ;;  %v563_v10 = vld [vmem:[%s2472_s25 + $0x88] sm:$0xff]  ;;  %v517_v14 = vld [vmem:[%s2464_s4 + $0x18] sm:$0xff]  ;;  %v2513_v16 = vadd.f32 %v548_v13, %v516_v11  ;;  %s3391_s22 = sld [smem:[#allocation52_spill]]  ;;  %s1509_s12 = scalar_lea.sflag [#allocation10], %s2457_s8 }
  0x6b   : > { %v2490_v7 = vadd.f32 %v562_v4, %v530_v2  ;;  %664 = vadd.xlane.f32.xlu0 %v2485_v3  ;;  %610 = vst [vmem:[%s2499_s21] sm:$0xff] %v2485_v3  ;;  %v2503_v12 = vadd.f32 %v563_v10, %v531_v9  ;;  %v549_v15 = vld [vmem:[%s2472_s25 + $0x18] sm:$0xff]  ;;  %611 = vst [vmem:[%s2499_s21 + $0x8] sm:$0xff] %v2492_v8  ;;  %v532_v18 = vld [vmem:[%s2464_s4 + $0x90] sm:$0xff]  ;;  %s507_s7 = scalar_lea.vmem %s3303_s3, %s2871_s23  ;;  %s504_s10 = scalar_lea.vmem %s3302_s2, %s2871_s23 }
  0x6c   : > { %v2515_v17 = vadd.f32 %v549_v15, %v517_v14  ;;  %v564_v19 = vld [vmem:[%s2472_s25 + $0x90] sm:$0xff]  ;;  %v533_v20 = vld [vmem:[%s2464_s4 + $0x98] sm:$0xff]  ;;  %v518_v23 = vld [vmem:[%s2464_s4 + $0x20] sm:$0xff]  ;;  %612 = vst [vmem:[%s2499_s21 + $0x10] sm:$0xff] %v2513_v16  ;;  %s2261_s17 = smov [#allocation9]  }
  0x6d   : > { %696 = vadd.xlane.f32.xlu1 %v2490_v7  ;;  %626 = vst [vmem:[%s2499_s21 + $0x80] sm:$0xff] %v2490_v7  ;;  %627 = vst [vmem:[%s2499_s21 + $0x88] sm:$0xff] %v2503_v12  ;;  %v2522_v21 = vadd.f32 %v564_v19, %v532_v18  ;;  %v565_v22 = vld [vmem:[%s2472_s25 + $0x98] sm:$0xff]  ;;  %v550_v24 = vld [vmem:[%s2472_s25 + $0x20] sm:$0xff]  ;;  %s2122_s27 = sshll.u32 %s2261_s17, 4  ;;  %s2123_s27 = int_to_ptr.vmem [resolvable:$false] %s2122_s27 }
  0x6e   : > { %613 = vst [vmem:[%s2499_s21 + $0x18] sm:$0xff] %v2515_v17  ;;  %v2531_v25 = vadd.f32 %v565_v22, %v533_v20  ;;  %v2533_v26 = vadd.f32 %v550_v24, %v518_v23  ;;  %v519_v27 = vld [vmem:[%s2464_s4 + $0x28] sm:$0xff]  ;;  %v534_v29 = vld [vmem:[%s2464_s4 + $0xa0] sm:$0xff]  ;;  %v520_v36 = vld [vmem:[%s2464_s4 + $0x30] sm:$0xff]  ;;  %s1763_s28 = sshll.u32 %s3389_s9, 5  ;;  %s2124_s29 = scalar_lea.vmem %s2123_s27, 8192 }
  0x6f   : > { %v551_v28 = vld [vmem:[%s2472_s25 + $0x28] sm:$0xff]  ;;  %666 = vadd.xlane.f32.xlu0 %v2492_v8  ;;  %628 = vst [vmem:[%s2499_s21 + $0x90] sm:$0xff] %v2522_v21  ;;  %v566_v31 = vld [vmem:[%s2472_s25 + $0xa0] sm:$0xff]  ;;  %v552_v37 = vld [vmem:[%s2472_s25 + $0x30] sm:$0xff] }
  0x70   : > { %v2541_v30 = vadd.f32 %v551_v28, %v519_v27  ;;  %v535_v32 = vld [vmem:[%s2464_s4 + $0xa8] sm:$0xff]  ;;  %629 = vst [vmem:[%s2499_s21 + $0x98] sm:$0xff] %v2531_v25  ;;  %614 = vst [vmem:[%s2499_s21 + $0x20] sm:$0xff] %v2533_v26  ;;  %v2551_v34 = vadd.f32 %v566_v31, %v534_v29  ;;  %v521_v38 = vld [vmem:[%s2464_s4 + $0x38] sm:$0xff]  ;;  %v2560_v39 = vadd.f32 %v552_v37, %v520_v36 }
  0x71   : > { %v567_v33 = vld [vmem:[%s2472_s25 + $0xa8] sm:$0xff]  ;;  %698 = vadd.xlane.f32.xlu1 %v2503_v12  ;;  %v553_v40 = vld [vmem:[%s2472_s25 + $0x38] sm:$0xff]  ;;  %v536_v41 = vld [vmem:[%s2464_s4 + $0xb0] sm:$0xff] }
  0x72   : > { %3367 = vst [vmem:[#allocation25_spill] sm:$0xff] %v2541_v30  ;;  %3368 = vst [vmem:[#allocation26_spill] sm:$0xff] %v2551_v34  ;;  %v2553_v35 = vadd.f32 %v567_v33, %v535_v32  ;;  %v568_v42 = vld [vmem:[%s2472_s25 + $0xb0] sm:$0xff]  ;;  %v2569_v43 = vadd.f32 %v553_v40, %v521_v38  ;;  %v537_v45 = vld [vmem:[%s2464_s4 + $0xb8] sm:$0xff] }
  0x73   : > { %615 = vst [vmem:[%s2499_s21 + $0x28] sm:$0xff] %v2541_v30  ;;  %630 = vst [vmem:[%s2499_s21 + $0xa0] sm:$0xff] %v2551_v34  ;;  %v2571_v44 = vadd.f32 %v568_v42, %v536_v41  ;;  %v569_v46 = vld [vmem:[%s2472_s25 + $0xb8] sm:$0xff]  ;;  %v522_v47 = vld [vmem:[%s2464_s4 + $0x40] sm:$0xff]  ;;  %668 = vadd.xlane.f32.xlu0 %v2513_v16 }
  0x74   : > { %3369 = vst [vmem:[#allocation27_spill] sm:$0xff] %v2553_v35  ;;  %631 = vst [vmem:[%s2499_s21 + $0xa8] sm:$0xff] %v2553_v35  ;;  %v2579_v48 = vadd.f32 %v569_v46, %v537_v45  ;;  %v554_v49 = vld [vmem:[%s2472_s25 + $0x40] sm:$0xff]  ;;  %v523_v50 = vld [vmem:[%s2464_s4 + $0x48] sm:$0xff] }
  0x75   : > { %3370 = vst [vmem:[#allocation28_spill] sm:$0xff] %v2569_v43  ;;  %3371 = vst [vmem:[#allocation29_spill] sm:$0xff] %v2571_v44  ;;  %v555_v51 = vld [vmem:[%s2472_s25 + $0x48] sm:$0xff]  ;;  %670 = vadd.xlane.f32.xlu1 %v2515_v17  ;;  %v2589_v52 = vadd.f32 %v554_v49, %v522_v47  ;;  %v538_v54 = vld [vmem:[%s2464_s4 + $0xc0] sm:$0xff] }
  0x76   : > { %616 = vst [vmem:[%s2499_s21 + $0x30] sm:$0xff] %v2560_v39  ;;  %3372 = vst [vmem:[#allocation30_spill] sm:$0xff] %v2579_v48  ;;  %v2591_v53 = vadd.f32 %v555_v51, %v523_v50  ;;  %v570_v55 = vld [vmem:[%s2472_s25 + $0xc0] sm:$0xff]  ;;  %v539_v56 = vld [vmem:[%s2464_s4 + $0xc8] sm:$0xff] }
  0x77   : > { %617 = vst [vmem:[%s2499_s21 + $0x38] sm:$0xff] %v2569_v43  ;;  %632 = vst [vmem:[%s2499_s21 + $0xb0] sm:$0xff] %v2571_v44  ;;  %v2598_v57 = vadd.f32 %v570_v55, %v538_v54  ;;  %v571_v58 = vld [vmem:[%s2472_s25 + $0xc8] sm:$0xff]  ;;  %v524_v59 = vld [vmem:[%s2464_s4 + $0x50] sm:$0xff]  ;;  %700 = vadd.xlane.f32.xlu0 %v2522_v21 }
  0x78   : > { %3373 = vst [vmem:[#allocation31_spill] sm:$0xff] %v2589_v52  ;;  %3374 = vst [vmem:[#allocation32_spill] sm:$0xff] %v2591_v53  ;;  %v556_v60 = vld [vmem:[%s2472_s25 + $0x50] sm:$0xff]  ;;  %v2607_v61 = vadd.f32 %v571_v58, %v539_v56  ;;  %v525_v63 = vld [vmem:[%s2464_s4 + $0x58] sm:$0xff] }
  0x79   : > { %633 = vst [vmem:[%s2499_s21 + $0xb8] sm:$0xff] %v2579_v48  ;;  %3375 = vst [vmem:[#allocation33_spill] sm:$0xff] %v2598_v57  ;;  %v2609_v62 = vadd.f32 %v556_v60, %v524_v59  ;;  %v557_v0 = vld [vmem:[%s2472_s25 + $0x58] sm:$0xff]  ;;  %v540_v1 = vld [vmem:[%s2464_s4 + $0xd0] sm:$0xff]  ;;  %702 = vadd.xlane.f32.xlu1 %v2531_v25 }
  0x7a   : > { %618 = vst [vmem:[%s2499_s21 + $0x40] sm:$0xff] %v2589_v52  ;;  %619 = vst [vmem:[%s2499_s21 + $0x48] sm:$0xff] %v2591_v53  ;;  %v2617_v2 = vadd.f32 %v557_v0, %v525_v63  ;;  %v572_v4 = vld [vmem:[%s2472_s25 + $0xd0] sm:$0xff]  ;;  %v541_v5 = vld [vmem:[%s2464_s4 + $0xd8] sm:$0xff] }
  0x7b   : > { %3376 = vst [vmem:[#allocation34_spill] sm:$0xff] %v2607_v61  ;;  %3377 = vst [vmem:[#allocation35_spill] sm:$0xff] %v2609_v62  ;;  %v573_v6 = vld [vmem:[%s2472_s25 + $0xd8] sm:$0xff]  ;;  %v2627_v9 = vadd.f32 %v572_v4, %v540_v1  ;;  %v526_v11 = vld [vmem:[%s2464_s4 + $0x60] sm:$0xff]  ;;  %672 = vadd.xlane.f32.xlu0 %v2533_v26 }
  0x7c   : > { %634 = vst [vmem:[%s2499_s21 + $0xc0] sm:$0xff] %v2598_v57  ;;  %3378 = vst [vmem:[#allocation36_spill] sm:$0xff] %v2617_v2  ;;  %v2629_v10 = vadd.f32 %v573_v6, %v541_v5  ;;  %v558_v13 = vld [vmem:[%s2472_s25 + $0x60] sm:$0xff]  ;;  %v527_v14 = vld [vmem:[%s2464_s4 + $0x68] sm:$0xff] }
  0x7d   : > { %635 = vst [vmem:[%s2499_s21 + $0xc8] sm:$0xff] %v2607_v61  ;;  %620 = vst [vmem:[%s2499_s21 + $0x50] sm:$0xff] %v2609_v62  ;;  %v2636_v15 = vadd.f32 %v558_v13, %v526_v11  ;;  %v559_v18 = vld [vmem:[%s2472_s25 + $0x68] sm:$0xff]  ;;  %v542_v19 = vld [vmem:[%s2464_s4 + $0xe0] sm:$0xff]  ;;  %674 = vadd.xlane.f32.xlu1 %v2541_v30 }
  0x7e   : > { %3379 = vst [vmem:[#allocation37_spill] sm:$0xff] %v2627_v9  ;;  %3380 = vst [vmem:[#allocation38_spill] sm:$0xff] %v2629_v10  ;;  %v574_v20 = vld [vmem:[%s2472_s25 + $0xe0] sm:$0xff]  ;;  %v2645_v22 = vadd.f32 %v559_v18, %v527_v14  ;;  %v543_v24 = vld [vmem:[%s2464_s4 + $0xe8] sm:$0xff] }
  0x7f   : > { %621 = vst [vmem:[%s2499_s21 + $0x58] sm:$0xff] %v2617_v2  ;;  %3381 = vst [vmem:[#allocation39_spill] sm:$0xff] %v2636_v15  ;;  %v2647_v23 = vadd.f32 %v574_v20, %v542_v19  ;;  %v575_v27 = vld [vmem:[%s2472_s25 + $0xe8] sm:$0xff]  ;;  %v528_v28 = vld [vmem:[%s2464_s4 + $0x70] sm:$0xff]  ;;  %704 = vadd.xlane.f32.xlu0 %v2551_v34 }
  0x80   : > { %636 = vst [vmem:[%s2499_s21 + $0xd0] sm:$0xff] %v2627_v9  ;;  %637 = vst [vmem:[%s2499_s21 + $0xd8] sm:$0xff] %v2629_v10  ;;  %v2655_v29 = vadd.f32 %v575_v27, %v543_v24  ;;  %v560_v31 = vld [vmem:[%s2472_s25 + $0x70] sm:$0xff]  ;;  %v529_v32 = vld [vmem:[%s2464_s4 + $0x78] sm:$0xff] }
  0x81   : > { %3382 = vst [vmem:[#allocation40_spill] sm:$0xff] %v2645_v22  ;;  %3383 = vst [vmem:[#allocation41_spill] sm:$0xff] %v2647_v23  ;;  %v561_v33 = vld [vmem:[%s2472_s25 + $0x78] sm:$0xff]  ;;  %v2665_v36 = vadd.f32 %v560_v31, %v528_v28  ;;  %v544_v38 = vld [vmem:[%s2464_s4 + $0xf0] sm:$0xff]  ;;  %706 = vadd.xlane.f32.xlu1 %v2553_v35 }
  0x82   : > { %622 = vst [vmem:[%s2499_s21 + $0x60] sm:$0xff] %v2636_v15  ;;  %3384 = vst [vmem:[#allocation42_spill] sm:$0xff] %v2655_v29  ;;  %v2667_v37 = vadd.f32 %v561_v33, %v529_v32  ;;  %v576_v40 = vld [vmem:[%s2472_s25 + $0xf0] sm:$0xff]  ;;  %v545_v41 = vld [vmem:[%s2464_s4 + $0xf8] sm:$0xff]  ;;  %s3057_s4 = sadd.s32 %s1764_s18, %s1763_s28 }
  0x83   : > { %623 = vst [vmem:[%s2499_s21 + $0x68] sm:$0xff] %v2645_v22  ;;  %638 = vst [vmem:[%s2499_s21 + $0xe0] sm:$0xff] %v2647_v23  ;;  %v2674_v42 = vadd.f32 %v576_v40, %v544_v38  ;;  %v577_v45 = vld [vmem:[%s2472_s25 + $0xf8] sm:$0xff]  ;;  %676 = vadd.xlane.f32.xlu0 %v2560_v39  ;;  %s1765_s0 = sshll.u32 %s3057_s4, 7 }
  0x84   : > { %3385 = vst [vmem:[#allocation43_spill] sm:$0xff] %v2665_v36  ;;  %3386 = vst [vmem:[#allocation44_spill] sm:$0xff] %v2667_v37  ;;  %v2681_v46 = vadd.f32 %v577_v45, %v545_v41  ;;  %s3065_s11 = scalar_lea.hbm %s3391_s22, %s1765_s0 }
  0x85   : > { %639 = vst [vmem:[%s2499_s21 + $0xe8] sm:$0xff] %v2655_v29  ;;  %3387 = vst [vmem:[#allocation45_spill] sm:$0xff] %v2674_v42  ;;  %678 = vadd.xlane.f32.xlu1 %v2569_v43 }
  0x86   : > { %624 = vst [vmem:[%s2499_s21 + $0x70] sm:$0xff] %v2665_v36  ;;  %625 = vst [vmem:[%s2499_s21 + $0x78] sm:$0xff] %v2667_v37 }
  0x87   : > { %3388 = vst [vmem:[#allocation46_spill] sm:$0xff] %v2681_v46  ;;  %640 = vst [vmem:[%s2499_s21 + $0xf0] sm:$0xff] %v2674_v42  ;;  %708 = vadd.xlane.f32.xlu0 %v2571_v44 }
  0x88   : > { %641 = vst [vmem:[%s2499_s21 + $0xf8] sm:$0xff] %v2681_v46 }
  0x89   : > { %710 = vadd.xlane.f32.xlu1 %v2579_v48 }
  0x8b   : > { %680 = vadd.xlane.f32.xlu0 %v2589_v52 }
  0x8d   : > { %682 = vadd.xlane.f32.xlu1 %v2591_v53 }
  0x8f   : > { %712 = vadd.xlane.f32.xlu0 %v2598_v57 }
  0x91   : > { %714 = vadd.xlane.f32.xlu1 %v2607_v61 }
  0x93   : > { %684 = vadd.xlane.f32.xlu0 %v2609_v62 }
  0x95   : > { %686 = vadd.xlane.f32.xlu1 %v2617_v2 }
  0x97   : > { %716 = vadd.xlane.f32.xlu0 %v2627_v9 }
  0x99   : > { %718 = vadd.xlane.f32.xlu1 %v2629_v10 }
  0x9b   : > { %688 = vadd.xlane.f32.xlu0 %v2636_v15 }
  0x9d   : > { %690 = vadd.xlane.f32.xlu1 %v2645_v22 }
  0x9f   : > { %720 = vadd.xlane.f32.xlu0 %v2647_v23 }
  0xa1   : > { %722 = vadd.xlane.f32.xlu1 %v2655_v29 }
  0xa3   : > { %692 = vadd.xlane.f32.xlu0 %v2665_v36 }
  0xa5   : > { %694 = vadd.xlane.f32.xlu1 %v2667_v37 }
  0xa7   : > { %724 = vadd.xlane.f32.xlu0 %v2674_v42 }
  0xa9   : > { %726 = vadd.xlane.f32.xlu1 %v2681_v46 }
  0xf4   : > { %v665_v47 = vpop.xlane.xlu0 %664 }
  0xf5   : > { %v729_v49 = vmul.f32 0.0078125, %v665_v47 }
  0xf6   : > { %v697_v50 = vpop.xlane.xlu1 %696 }
  0xf7   : > { %v745_v51 = vmul.f32 0.0078125, %v697_v50  ;;  %v2710_v54 = vsub.f32 %v2485_v3, %v729_v49 }
  0xf8   : > { %v667_v56 = vpop.xlane.xlu0 %666 }
  0xf9   : > { %v2713_v55 = vsub.f32 %v2490_v7, %v745_v51  ;;  %v730_v58 = vmul.f32 0.0078125, %v667_v56  ;;  %v793_v59 = vmul.f32 %v2710_v54, %v2710_v54 }
  0xfa   : > { %v699_v60 = vpop.xlane.xlu1 %698 }
  0xfb   : > { %v746_v63 = vmul.f32 0.0078125, %v699_v60  ;;  %v2718_v0 = vsub.f32 %v2492_v8, %v730_v58  ;;  %825 = vadd.xlane.f32.xlu0 %v793_v59  ;;  %v809_v1 = vmul.f32 %v2713_v55, %v2713_v55 }
  0xfc   : > { %v669_v5 = vpop.xlane.xlu0 %668 }
  0xfd   : > { %v2723_v4 = vsub.f32 %v2503_v12, %v746_v63  ;;  %v731_v6 = vmul.f32 0.0078125, %v669_v5  ;;  %v794_v11 = vmul.f32 %v2718_v0, %v2718_v0 }
  0xfe   : > { %v671_v13 = vpop.xlane.xlu1 %670 }
  0xff   : > { %v732_v14 = vmul.f32 0.0078125, %v671_v13  ;;  %v2728_v18 = vsub.f32 %v2513_v16, %v731_v6  ;;  %857 = vadd.xlane.f32.xlu0 %v809_v1  ;;  %827 = vadd.xlane.f32.xlu1 %v794_v11  ;;  %v810_v19 = vmul.f32 %v2723_v4, %v2723_v4 }
 0x100   : > { %v701_v24 = vpop.xlane.xlu0 %700 }
 0x101   : > { %v2733_v20 = vsub.f32 %v2515_v17, %v732_v14  ;;  %v747_v27 = vmul.f32 0.0078125, %v701_v24  ;;  %v795_v28 = vmul.f32 %v2728_v18, %v2728_v18 }
 0x102   : > { %v703_v31 = vpop.xlane.xlu1 %702 }
 0x103   : > { %v748_v32 = vmul.f32 0.0078125, %v703_v31  ;;  %v2738_v33 = vsub.f32 %v2522_v21, %v747_v27  ;;  %859 = vadd.xlane.f32.xlu1 %v810_v19  ;;  %829 = vadd.xlane.f32.xlu0 %v795_v28  ;;  %v796_v38 = vmul.f32 %v2733_v20, %v2733_v20  ;;  %v1964_v31 = vld [vmem:[#allocation7 + $0x38] sm:$0xff]  }
 0x104   : > { %v673_v41 = vpop.xlane.xlu0 %672  ;;  %1795 = vmatprep.subr.bf16.mxu0 %v1964_v31  ;;  %1843 = vmatprep.subr.bf16.mxu1 %v1964_v31 }
 0x105   : > { %v2743_v40 = vsub.f32 %v2531_v25, %v748_v32  ;;  %v733_v45 = vmul.f32 0.0078125, %v673_v41  ;;  %v811_v47 = vmul.f32 %v2738_v33, %v2738_v33  ;;  %1796 = vmatpush3.bf16.msra.mxu0 %v1964_v31  ;;  %1851 = vmatpush3.bf16.msra.mxu1 %v1964_v31 }
 0x106   : > { %v675_v49 = vpop.xlane.xlu1 %674 }
 0x107   : > { %v734_v50 = vmul.f32 0.0078125, %v675_v49  ;;  %v2748_v51 = vsub.f32 %v2533_v26, %v733_v45  ;;  %831 = vadd.xlane.f32.xlu1 %v796_v38  ;;  %861 = vadd.xlane.f32.xlu0 %v811_v47  ;;  %v812_v56 = vmul.f32 %v2743_v40, %v2743_v40 }
 0x108   : > { %v705_v59 = vpop.xlane.xlu0 %704 }
 0x109   : > { %v2753_v58 = vsub.f32 %v2541_v30, %v734_v50  ;;  %v749_v60 = vmul.f32 0.0078125, %v705_v59  ;;  %v797_v63 = vmul.f32 %v2748_v51, %v2748_v51  ;;  %v1965_v59 = vld [vmem:[#allocation7 + $0x30] sm:$0xff]  }
 0x10a   : > { %v707_v1 = vpop.xlane.xlu1 %706  ;;  %1797 = vmatprep.subr.bf16.mxu0 %v1965_v59  ;;  %1844 = vmatprep.subr.bf16.mxu1 %v1965_v59 }
 0x10b   : > { %v750_v5 = vmul.f32 0.0078125, %v707_v1  ;;  %v2758_v6 = vsub.f32 %v2551_v34, %v749_v60  ;;  %863 = vadd.xlane.f32.xlu1 %v812_v56  ;;  %833 = vadd.xlane.f32.xlu0 %v797_v63  ;;  %v798_v11 = vmul.f32 %v2753_v58, %v2753_v58  ;;  %v2898_v34 = vld [vmem:[%s504_s10] ss:$0 sm:$0xff] }
 0x10c   : > { %v677_v14 = vpop.xlane.xlu0 %676  ;;  %1798 = vmatpush3.bf16.msra.mxu0 %v1965_v59  ;;  %1852 = vmatpush3.bf16.msra.mxu1 %v1965_v59  ;;  %v1967_v59 = vld [vmem:[#allocation7 + $0x20] sm:$0xff]  }
 0x10d   : > { %v2763_v13 = vsub.f32 %v2553_v35, %v750_v5  ;;  %v735_v19 = vmul.f32 0.0078125, %v677_v14  ;;  %v813_v24 = vmul.f32 %v2758_v6, %v2758_v6  ;;  %v2880_v35 = vld [vmem:[%s3305_s5] ss:$0 sm:$0xff] }
 0x10e   : > { %v679_v27 = vpop.xlane.xlu1 %678 }
 0x10f   : > { %v736_v28 = vmul.f32 0.0078125, %v679_v27  ;;  %v2768_v32 = vsub.f32 %v2560_v39, %v735_v19  ;;  %835 = vadd.xlane.f32.xlu1 %v798_v11  ;;  %865 = vadd.xlane.f32.xlu0 %v813_v24  ;;  %v814_v38 = vmul.f32 %v2763_v13, %v2763_v13  ;;  %v1966_v27 = vld [vmem:[#allocation7 + $0x28] sm:$0xff]  }
 0x110   : > { %v709_v45 = vpop.xlane.xlu0 %708  ;;  %1799 = vmatprep.subr.bf16.mxu0 %v1966_v27  ;;  %1845 = vmatprep.subr.bf16.mxu1 %v1966_v27 }
 0x111   : > { %v2773_v41 = vsub.f32 %v2569_v43, %v736_v28  ;;  %v751_v47 = vmul.f32 0.0078125, %v709_v45  ;;  %v799_v49 = vmul.f32 %v2768_v32, %v2768_v32  ;;  %1800 = vmatpush3.bf16.msra.mxu0 %v1966_v27  ;;  %1853 = vmatpush3.bf16.msra.mxu1 %v1966_v27 }
 0x112   : > { %v711_v50 = vpop.xlane.xlu1 %710  ;;  %1801 = vmatprep.subr.bf16.mxu0 %v1967_v59  ;;  %1846 = vmatprep.subr.bf16.mxu1 %v1967_v59 }
 0x113   : > { %v752_v56 = vmul.f32 0.0078125, %v711_v50  ;;  %v2778_v60 = vsub.f32 %v2571_v44, %v751_v47  ;;  %867 = vadd.xlane.f32.xlu1 %v814_v38  ;;  %837 = vadd.xlane.f32.xlu0 %v799_v49  ;;  %v800_v63 = vmul.f32 %v2773_v41, %v2773_v41 }
 0x114   : > { %v681_v5 = vpop.xlane.xlu0 %680 }
 0x115   : > { %v2783_v1 = vsub.f32 %v2579_v48, %v752_v56  ;;  %v737_v11 = vmul.f32 0.0078125, %v681_v5  ;;  %v815_v14 = vmul.f32 %v2778_v60, %v2778_v60  ;;  %1802 = vmatpush3.bf16.msra.mxu0 %v1967_v59  ;;  %1854 = vmatpush3.bf16.msra.mxu1 %v1967_v59 }
 0x116   : > { %v683_v19 = vpop.xlane.xlu1 %682 }
 0x117   : > { %v738_v24 = vmul.f32 0.0078125, %v683_v19  ;;  %v2788_v28 = vsub.f32 %v2589_v52, %v737_v11  ;;  %839 = vadd.xlane.f32.xlu1 %v800_v63  ;;  %869 = vadd.xlane.f32.xlu0 %v815_v14  ;;  %v816_v31 = vmul.f32 %v2783_v1, %v2783_v1 }
 0x118   : > { %v713_v45 = vpop.xlane.xlu0 %712 }
 0x119   : > { %v2793_v38 = vsub.f32 %v2591_v53, %v738_v24  ;;  %v753_v47 = vmul.f32 0.0078125, %v713_v45  ;;  %v801_v49 = vmul.f32 %v2788_v28, %v2788_v28 }
 0x11a   : > { %v715_v50 = vpop.xlane.xlu1 %714 }
 0x11b   : > { %v754_v56 = vmul.f32 0.0078125, %v715_v50  ;;  %v2798_v63 = vsub.f32 %v2598_v57, %v753_v47  ;;  %871 = vadd.xlane.f32.xlu1 %v816_v31  ;;  %841 = vadd.xlane.f32.xlu0 %v801_v49  ;;  %v802_v5 = vmul.f32 %v2793_v38, %v2793_v38  ;;  %v1968_v47 = vld [vmem:[#allocation7 + $0x18] sm:$0xff]   ;;  %v1970_v57 = vld [vmem:[#allocation7 + $0x8] sm:$0xff]  }
 0x11c   : > { %v685_v14 = vpop.xlane.xlu0 %684  ;;  %1803 = vmatprep.subr.bf16.mxu0 %v1968_v47  ;;  %1847 = vmatprep.subr.bf16.mxu1 %v1968_v47 }
 0x11d   : > { %v2803_v11 = vsub.f32 %v2607_v61, %v754_v56  ;;  %v739_v19 = vmul.f32 0.0078125, %v685_v14  ;;  %v817_v24 = vmul.f32 %v2798_v63, %v2798_v63  ;;  %1804 = vmatpush3.bf16.msra.mxu0 %v1968_v47  ;;  %1855 = vmatpush3.bf16.msra.mxu1 %v1968_v47  ;;  %v1969_v61 = vld [vmem:[#allocation7 + $0x10] sm:$0xff]  }
 0x11e   : > { %v687_v27 = vpop.xlane.xlu1 %686  ;;  %1805 = vmatprep.subr.bf16.mxu0 %v1969_v61  ;;  %1848 = vmatprep.subr.bf16.mxu1 %v1969_v61 }
 0x11f   : > { %v740_v45 = vmul.f32 0.0078125, %v687_v27  ;;  %v2808_v31 = vsub.f32 %v2609_v62, %v739_v19  ;;  %843 = vadd.xlane.f32.xlu1 %v802_v5  ;;  %873 = vadd.xlane.f32.xlu0 %v817_v24  ;;  %v818_v49 = vmul.f32 %v2803_v11, %v2803_v11 }
 0x120   : > { %v717_v56 = vpop.xlane.xlu0 %716 }
 0x121   : > { %v2813_v50 = vsub.f32 %v2617_v2, %v740_v45  ;;  %v755_v14 = vmul.f32 0.0078125, %v717_v56  ;;  %v803_v59 = vmul.f32 %v2808_v31, %v2808_v31  ;;  %1806 = vmatpush3.bf16.msra.mxu0 %v1969_v61  ;;  %1856 = vmatpush3.bf16.msra.mxu1 %v1969_v61 }
 0x122   : > { %v719_v27 = vpop.xlane.xlu1 %718  ;;  %1807 = vmatprep.subr.bf16.mxu0 %v1970_v57  ;;  %1849 = vmatprep.subr.bf16.mxu1 %v1970_v57 }
 0x123   : > { %v756_v19 = vmul.f32 0.0078125, %v719_v27  ;;  %v2818_v5 = vsub.f32 %v2627_v9, %v755_v14  ;;  %875 = vadd.xlane.f32.xlu1 %v818_v49  ;;  %845 = vadd.xlane.f32.xlu0 %v803_v59  ;;  %v804_v24 = vmul.f32 %v2813_v50, %v2813_v50 }
 0x124   : > { %v689_v56 = vpop.xlane.xlu0 %688 }
 0x125   : > { %v2823_v45 = vsub.f32 %v2629_v10, %v756_v19  ;;  %v741_v53 = vmul.f32 0.0078125, %v689_v56  ;;  %v819_v47 = vmul.f32 %v2818_v5, %v2818_v5  ;;  %1808 = vmatpush3.bf16.msra.mxu0 %v1970_v57  ;;  %1857 = vmatpush3.bf16.msra.mxu1 %v1970_v57 }
 0x126   : > { %v691_v27 = vpop.xlane.xlu1 %690 }
 0x127   : > { %v742_v14 = vmul.f32 0.0078125, %v691_v27  ;;  %v2828_v49 = vsub.f32 %v2636_v15, %v741_v53  ;;  %847 = vadd.xlane.f32.xlu1 %v804_v24  ;;  %877 = vadd.xlane.f32.xlu0 %v819_v47  ;;  %v820_v59 = vmul.f32 %v2823_v45, %v2823_v45  ;;  %v1971_v15 = vld [vmem:[#allocation7] sm:$0xff]  }
 0x128   : > { %v721_v56 = vpop.xlane.xlu0 %720  ;;  %1809 = vmatprep.subr.bf16.mxu0 %v1971_v15  ;;  %1850 = vmatprep.subr.bf16.mxu1 %v1971_v15 }
 0x129   : > { %v2833_v19 = vsub.f32 %v2645_v22, %v742_v14  ;;  %v757_v10 = vmul.f32 0.0078125, %v721_v56  ;;  %v805_v61 = vmul.f32 %v2828_v49, %v2828_v49  ;;  %1810 = vmatpush3.bf16.msra.mxu0 %v1971_v15  ;;  %1858 = vmatpush3.bf16.msra.mxu1 %v1971_v15 }
 0x12a   : > { %v723_v27 = vpop.xlane.xlu1 %722 }
 0x12b   : > { %v758_v53 = vmul.f32 0.0078125, %v723_v27  ;;  %v2838_v24 = vsub.f32 %v2647_v23, %v757_v10  ;;  %879 = vadd.xlane.f32.xlu1 %v820_v59  ;;  %849 = vadd.xlane.f32.xlu0 %v805_v61  ;;  %v806_v47 = vmul.f32 %v2833_v19, %v2833_v19 }
 0x12c   : > { %v693_v56 = vpop.xlane.xlu0 %692 }
 0x12d   : > { %v2843_v14 = vsub.f32 %v2655_v29, %v758_v53  ;;  %v743_v22 = vmul.f32 0.0078125, %v693_v56  ;;  %v821_v57 = vmul.f32 %v2838_v24, %v2838_v24 }
 0x12e   : > { %v695_v27 = vpop.xlane.xlu1 %694 }
 0x12f   : > { %v744_v10 = vmul.f32 0.0078125, %v695_v27  ;;  %v2848_v59 = vsub.f32 %v2665_v36, %v743_v22  ;;  %851 = vadd.xlane.f32.xlu1 %v806_v47  ;;  %881 = vadd.xlane.f32.xlu0 %v821_v57  ;;  %v822_v61 = vmul.f32 %v2843_v14, %v2843_v14 }
 0x130   : > { %v725_v29 = vpop.xlane.xlu0 %724 }
 0x131   : > { %v2853_v53 = vsub.f32 %v2667_v37, %v744_v10  ;;  %v759_v56 = vmul.f32 0.0078125, %v725_v29  ;;  %v807_v23 = vmul.f32 %v2848_v59, %v2848_v59 }
 0x132   : > { %v727_v2 = vpop.xlane.xlu1 %726 }
 0x133   : > { %v760_v9 = vmul.f32 0.0078125, %v727_v2  ;;  %v2858_v15 = vsub.f32 %v2674_v42, %v759_v56  ;;  %883 = vadd.xlane.f32.xlu1 %v822_v61  ;;  %853 = vadd.xlane.f32.xlu0 %v807_v23  ;;  %v808_v22 = vmul.f32 %v2853_v53, %v2853_v53 }
 0x135   : > { %v2863_v47 = vsub.f32 %v2681_v46, %v760_v9  ;;  %v823_v29 = vmul.f32 %v2858_v15, %v2858_v15 }
 0x137   : > { %855 = vadd.xlane.f32.xlu1 %v808_v22  ;;  %885 = vadd.xlane.f32.xlu0 %v823_v29  ;;  %v824_v2 = vmul.f32 %v2863_v47, %v2863_v47 }
 0x13b   : > { %887 = vadd.xlane.f32.xlu1 %v824_v2  ;;  %v1095_v2 = vlaneseq }
 0x184   : > { %v826_v57 = vpop.xlane.xlu0 %825 }
 0x185   : > { %v889_v27 = vmul.f32 0.0078125, %v826_v57 }
 0x187   : > { %v921_v10 = vadd.f32 1e-05, %v889_v27 }
 0x188   : > { %v828_v23 = vpop.xlane.xlu1 %827  ;;  %v858_v61 = vpop.xlane.xlu0 %857 }
 0x189   : > { %1972 = vrsqrt.f32 %v921_v10  ;;  %v890_v56 = vmul.f32 0.0078125, %v828_v23  ;;  %v905_v9 = vmul.f32 0.0078125, %v858_v61  ;;  %v1096_v61 = vshrl.u32 %v1095_v2, 7 }
 0x18b   : > { %v922_v46 = vadd.f32 1e-05, %v890_v56  ;;  %v937_v42 = vadd.f32 1e-05, %v905_v9 }
 0x18c   : > { %v860_v37 = vpop.xlane.xlu1 %859  ;;  %v830_v36 = vpop.xlane.xlu0 %829 }
 0x18d   : > { %1974 = vrsqrt.f32 %v922_v46  ;;  %v906_v22 = vmul.f32 0.0078125, %v860_v37  ;;  %v891_v29 = vmul.f32 0.0078125, %v830_v36  ;;  %v643_v46 = vld [vmem:[%s507_s7] sm:$0x1]  ;;  %s1542_s7 = sshll.u32 %s2499_s21, 4  ;;  %s3068_s7 = int_to_ptr.vmem [resolvable:$true] %s1542_s7 }
 0x18e   : > { %1976 = vrsqrt.f32 %v937_v42  ;;  %s2118_s26 = scalar_lea.vmem %s3068_s7, 4096  ;;  %p2125_p5 = scmp.lt.s32.totalorder %s3068_s7, %s2123_s27 }
 0x18f   : > { %v938_v57 = vadd.f32 1e-05, %v906_v22  ;;  %v923_v27 = vadd.f32 1e-05, %v891_v29  ;;  %p2119_p4 = scmp.ne.s32.totalorder %s3068_s7, %s2118_s26  ;;  %p2126_p13 = scmp.lt.s32.totalorder %s2124_s29, %s2118_s26 }
 0x190   : > { %v832_v52 = vpop.xlane.xlu1 %831  ;;  %v862_v62 = vpop.xlane.xlu0 %861 }
 0x191   : > { %1978 = vrsqrt.f32 %v938_v57  ;;  %v892_v10 = vmul.f32 0.0078125, %v832_v52  ;;  %v907_v23 = vmul.f32 0.0078125, %v862_v62  ;;  %v1093_v52 = vadd.f32 1.0, %v643_v46  ;;  %p2120_p8 = pnand %p2119_p4, %p2404_p12  ;;  %p2127_p0 = por %p2126_p13, %p2125_p5 }
 0x192   : > { %1980 = vrsqrt.f32 %v923_v27  ;;  %v1097_v62 = vsub.s32 0, %v1096_v61 }
 0x193   : > { %v924_v56 = vadd.f32 1e-05, %v892_v10  ;;  %v939_v9 = vadd.f32 1e-05, %v907_v23  ;;  %p2121_p3 = pneg %p2120_p8 }
 0x194   : > { %v864_v37 = vpop.xlane.xlu1 %863  ;;  %v834_v36 = vpop.xlane.xlu0 %833  ;;  %v2893_v61 = vrot.slane %v1093_v52, %v1097_v62 }
 0x195   : > { %1982 = vrsqrt.f32 %v924_v56  ;;  %v908_v42 = vmul.f32 0.0078125, %v864_v37  ;;  %v893_v22 = vmul.f32 0.0078125, %v834_v36  ;;  %v2886_v56 = vld [vmem:[%s3306_s6] ss:$0 sm:$0xff]  ;;  %p2128_p2 = pnand %p2127_p0, %p2121_p3 }
 0x196   : > { %v1973_v29 = vpop.eup %1972  ;;  %1984 = vrsqrt.f32 %v939_v9 }
 0x197   : > { %v940_v57 = vadd.f32 1e-05, %v908_v42  ;;  %v925_v2 = vadd.f32 1e-05, %v893_v22  ;;  %v985_v27 = vmul.f32 %v1973_v29, %v2710_v54 }
 0x198   : > { %v836_v10 = vpop.xlane.xlu1 %835  ;;  %v866_v23 = vpop.xlane.xlu0 %865 }
 0x199   : > { %1986 = vrsqrt.f32 %v940_v57  ;;  %v894_v9 = vmul.f32 0.0078125, %v836_v10  ;;  %v909_v37 = vmul.f32 0.0078125, %v866_v23  ;;  %v1023_v36 = vmul.f32 %v2880_v35, %v985_v27 }
 0x19a   : > { %v1975_v48 = vpop.eup %1974  ;;  %1988 = vrsqrt.f32 %v925_v2 }
 0x19b   : > { %v1977_v54 = vpop.eup %1976  ;;  %v926_v46 = vadd.f32 1e-05, %v894_v9  ;;  %v941_v42 = vadd.f32 1e-05, %v909_v37  ;;  %v986_v22 = vmul.f32 %v1975_v48, %v2718_v0  ;;  %v1061_v29 = vadd.f32 %v2886_v56, %v1023_v36 }
 0x19c   : > { %v868_v57 = vpop.xlane.xlu1 %867  ;;  %v838_v10 = vpop.xlane.xlu0 %837  ;;  %v1001_v23 = vmul.f32 %v1977_v54, %v2713_v55 }
 0x19d   : > { %1990 = vrsqrt.f32 %v926_v46  ;;  %v910_v27 = vmul.f32 0.0078125, %v868_v57  ;;  %v895_v2 = vmul.f32 0.0078125, %v838_v10  ;;  %v1024_v30 = vmul.f32 %v2880_v35, %v986_v22 }
 0x19e   : > { %v1979_v52 = vpop.eup %1978  ;;  %1992 = vrsqrt.f32 %v941_v42  ;;  %v1100_v62 = vmul.f32 %v2893_v61, %v1061_v29  ;;  %v1039_v9 = vmul.f32 %v2880_v35, %v1001_v23 }
 0x19f   : > { %v1981_v48 = vpop.eup %1980  ;;  %v942_v0 = vadd.f32 1e-05, %v910_v27  ;;  %v927_v37 = vadd.f32 1e-05, %v895_v2  ;;  %v1062_v36 = vadd.f32 %v2886_v56, %v1024_v30  ;;  %v1002_v55 = vmul.f32 %v1979_v52, %v2723_v4 }
 0x1a0   : > { %v840_v54 = vpop.xlane.xlu1 %839  ;;  %v870_v46 = vpop.xlane.xlu0 %869  ;;  %v1138_v57 = vadd.f32 %v2898_v34, %v1100_v62  ;;  %v1077_v10 = vadd.f32 %v2886_v56, %v1039_v9  ;;  %v987_v22 = vmul.f32 %v1981_v48, %v2728_v18 }
 0x1a1   : > { %1994 = vrsqrt.f32 %v942_v0  ;;  %v896_v42 = vmul.f32 0.0078125, %v840_v54  ;;  %v911_v29 = vmul.f32 0.0078125, %v870_v46  ;;  %v1101_v23 = vmul.f32 %v2893_v61, %v1062_v36 }
 0x1a2   : > { %v1983_v44 = vpop.eup %1982  ;;  %1996 = vrsqrt.f32 %v927_v37  ;;  %v1040_v27 = vmul.f32 %v2880_v35, %v1002_v55  ;;  %v1116_v30 = vmul.f32 %v2893_v61, %v1077_v10  ;;  %v1025_v4 = vmul.f32 %v2880_v35, %v987_v22 }
 0x1a3   : > { %v1985_v2 = vpop.eup %1984  ;;  %v928_v52 = vadd.f32 1e-05, %v896_v42  ;;  %v943_v62 = vadd.f32 1e-05, %v911_v29  ;;  %v1139_v9 = vadd.f32 %v2898_v34, %v1101_v23  ;;  %v988_v18 = vmul.f32 %v1983_v44, %v2733_v20 }
 0x1a4   : > { %v872_v48 = vpop.xlane.xlu1 %871  ;;  %v842_v0 = vpop.xlane.xlu0 %841  ;;  %v1078_v54 = vadd.f32 %v2886_v56, %v1040_v27  ;;  %v1154_v36 = vadd.f32 %v2898_v34, %v1116_v30  ;;  %v1063_v37 = vadd.f32 %v2886_v56, %v1025_v4  ;;  %v1003_v55 = vmul.f32 %v1985_v2, %v2738_v33 }
 0x1a5   : > { %1998 = vrsqrt.f32 %v928_v52  ;;  %v912_v46 = vmul.f32 0.0078125, %v872_v48  ;;  %v897_v10 = vmul.f32 0.0078125, %v842_v0  ;;  %v1170_v22 = vpack.c.bf16 %v1139_v9, %v1138_v57 }
 0x1a6   : > { %v1987_v42 = vpop.eup %1986  ;;  %2000 = vrsqrt.f32 %v943_v62  ;;  %v1117_v29 = vmul.f32 %v2893_v61, %v1078_v54  ;;  %v1026_v44 = vmul.f32 %v2880_v35, %v988_v18  ;;  %v1102_v20 = vmul.f32 %v2893_v61, %v1063_v37 }
 0x1a7   : > { %v1989_v23 = vpop.eup %1988  ;;  %v944_v27 = vadd.f32 1e-05, %v912_v46  ;;  %v929_v43 = vadd.f32 1e-05, %v897_v10  ;;  %1811 = vmatprep.mubr.bf16.mxu0 %v1170_v22  ;;  %v1004_v30 = vmul.f32 %v1987_v42, %v2743_v40  ;;  %v1041_v33 = vmul.f32 %v2880_v35, %v1003_v55 }
 0x1a8   : > { %v844_v4 = vpop.xlane.xlu1 %843  ;;  %v874_v2 = vpop.xlane.xlu0 %873  ;;  %v1155_v57 = vadd.f32 %v2898_v34, %v1117_v29  ;;  %v1064_v52 = vadd.f32 %v2886_v56, %v1026_v44  ;;  %v1140_v62 = vadd.f32 %v2898_v34, %v1102_v20  ;;  %v989_v9 = vmul.f32 %v1989_v23, %v2748_v51 }
 0x1a9   : > { %2002 = vrsqrt.f32 %v944_v27  ;;  %v898_v18 = vmul.f32 0.0078125, %v844_v4  ;;  %v913_v48 = vmul.f32 0.0078125, %v874_v2  ;;  %v1042_v0 = vmul.f32 %v2880_v35, %v1004_v30 }
 0x1aa   : > { %v1991_v54 = vpop.eup %1990  ;;  %2004 = vrsqrt.f32 %v929_v43  ;;  %v1178_v40 = vpack.c.bf16 %v1155_v57, %v1154_v36  ;;  %v1103_v37 = vmul.f32 %v2893_v61, %v1064_v52  ;;  %v1079_v55 = vadd.f32 %v2886_v56, %v1041_v33 }
 0x1ab   : > { %v1993_v46 = vpop.eup %1992  ;;  %v930_v10 = vadd.f32 1e-05, %v898_v18  ;;  %v945_v22 = vadd.f32 1e-05, %v913_v48  ;;  %v1080_v42 = vadd.f32 %v2886_v56, %v1042_v0  ;;  %v990_v29 = vmul.f32 %v1991_v54, %v2753_v58 }
 0x1ac   : > { %1827 = vmatprep.mubr.bf16.mxu1 %v1178_v40  ;;  %v876_v51 = vpop.xlane.xlu1 %875  ;;  %v846_v44 = vpop.xlane.xlu0 %845  ;;  %v1141_v20 = vadd.f32 %v2898_v34, %v1103_v37  ;;  %v1118_v23 = vmul.f32 %v2893_v61, %v1079_v55  ;;  %v1027_v43 = vmul.f32 %v2880_v35, %v989_v9  ;;  %v1005_v36 = vmul.f32 %v1993_v46, %v2758_v6 }
 0x1ad   : > { %2006 = vrsqrt.f32 %v930_v10  ;;  %v914_v27 = vmul.f32 0.0078125, %v876_v51  ;;  %v899_v30 = vmul.f32 0.0078125, %v846_v44  ;;  %v1119_v33 = vmul.f32 %v2893_v61, %v1080_v42 }
 0x1ae   : > { %v1995_v4 = vpop.eup %1994  ;;  %2008 = vrsqrt.f32 %v945_v22  ;;  %v1171_v2 = vpack.c.bf16 %v1141_v20, %v1140_v62  ;;  %v1156_v58 = vadd.f32 %v2898_v34, %v1118_v23  ;;  %v1028_v57 = vmul.f32 %v2880_v35, %v990_v29 }
 0x1af   : > { %v1997_v52 = vpop.eup %1996  ;;  %v946_v18 = vadd.f32 1e-05, %v914_v27  ;;  %v931_v48 = vadd.f32 1e-05, %v899_v30  ;;  %v1157_v0 = vadd.f32 %v2898_v34, %v1119_v33  ;;  %v1065_v9 = vadd.f32 %v2886_v56, %v1027_v43 }
 0x1b0   : > { %1812 = vmatmul.mubr.bf16.vlgmr.msra.gmra.mxu0 %v1171_v2  ;;  %v848_v6 = vpop.xlane.xlu1 %847  ;;  %v878_v54 = vpop.xlane.xlu0 %877  ;;  %v1066_v40 = vadd.f32 %v2886_v56, %v1028_v57  ;;  %v1006_v37 = vmul.f32 %v1995_v4, %v2763_v13  ;;  %v1043_v62 = vmul.f32 %v2880_v35, %v1005_v36  ;;  %v991_v55 = vmul.f32 %v1997_v52, %v2768_v32 }
 0x1b1   : > { %2010 = vrsqrt.f32 %v946_v18  ;;  %v900_v46 = vmul.f32 0.0078125, %v848_v6  ;;  %v915_v10 = vmul.f32 0.0078125, %v878_v54  ;;  %v1179_v22 = vpack.c.bf16 %v1157_v0, %v1156_v58 }
 0x1b2   : > { %v1999_v42 = vpop.eup %1998  ;;  %2012 = vrsqrt.f32 %v931_v48  ;;  %v1104_v29 = vmul.f32 %v2893_v61, %v1065_v9  ;;  %v1105_v51 = vmul.f32 %v2893_v61, %v1066_v40  ;;  %v1044_v44 = vmul.f32 %v2880_v35, %v1006_v37 }
 0x1b3   : > { %v2001_v20 = vpop.eup %2000  ;;  %v932_v23 = vadd.f32 1e-05, %v900_v46  ;;  %v947_v43 = vadd.f32 1e-05, %v915_v10  ;;  %1828 = vmatmul.mubr.bf16.vlgmr.msra.gmra.mxu1 %v1179_v22  ;;  %v1081_v13 = vadd.f32 %v2886_v56, %v1043_v62  ;;  %v992_v32 = vmul.f32 %v1999_v42, %v2773_v41 }
 0x1b4   : > { %v880_v36 = vpop.xlane.xlu1 %879  ;;  %v850_v27 = vpop.xlane.xlu0 %849  ;;  %v1142_v30 = vadd.f32 %v2898_v34, %v1104_v29  ;;  %v1143_v33 = vadd.f32 %v2898_v34, %v1105_v51  ;;  %v1082_v4 = vadd.f32 %v2886_v56, %v1044_v44  ;;  %v1029_v2 = vmul.f32 %v2880_v35, %v991_v55 }
 0x1b5   : > { %2014 = vrsqrt.f32 %v932_v23  ;;  %v916_v58 = vmul.f32 0.0078125, %v880_v36  ;;  %v901_v57 = vmul.f32 0.0078125, %v850_v27  ;;  %v1120_v52 = vmul.f32 %v2893_v61, %v1081_v13 }
 0x1b6   : > { %v2003_v18 = vpop.eup %2002  ;;  %2016 = vrsqrt.f32 %v947_v43  ;;  %v1172_v48 = vpack.c.bf16 %v1143_v33, %v1142_v30  ;;  %v1121_v41 = vmul.f32 %v2893_v61, %v1082_v4  ;;  %v1030_v0 = vmul.f32 %v2880_v35, %v992_v32 }
 0x1b7   : > { %v2005_v9 = vpop.eup %2004  ;;  %v948_v6 = vadd.f32 1e-05, %v916_v58  ;;  %v933_v54 = vadd.f32 1e-05, %v901_v57  ;;  %v1158_v40 = vadd.f32 %v2898_v34, %v1120_v52  ;;  %v1067_v37 = vadd.f32 %v2886_v56, %v1029_v2 }
 0x1b8   : > { %1815 = vmatprep.mubr.bf16.mxu0 %v1172_v48  ;;  %v852_v62 = vpop.xlane.xlu1 %851  ;;  %v882_v55 = vpop.xlane.xlu0 %881  ;;  %v1159_v46 = vadd.f32 %v2898_v34, %v1121_v41  ;;  %v1068_v10 = vadd.f32 %v2886_v56, %v1030_v0  ;;  %v1007_v22 = vmul.f32 %v2001_v20, %v2778_v60  ;;  %v1008_v42 = vmul.f32 %v2003_v18, %v2783_v1 }
 0x1b9   : > { %2018 = vrsqrt.f32 %v948_v6  ;;  %v902_v29 = vmul.f32 0.0078125, %v852_v62  ;;  %v917_v51 = vmul.f32 0.0078125, %v882_v55  ;;  %v1106_v44 = vmul.f32 %v2893_v61, %v1067_v37 }
 0x1ba   : > { %v2007_v23 = vpop.eup %2006  ;;  %2020 = vrsqrt.f32 %v933_v54  ;;  %v1180_v43 = vpack.c.bf16 %v1159_v46, %v1158_v40  ;;  %v1107_v13 = vmul.f32 %v2893_v61, %v1068_v10  ;;  %v1045_v32 = vmul.f32 %v2880_v35, %v1007_v22 }
 0x1bb   : > { %v2009_v36 = vpop.eup %2008  ;;  %v934_v27 = vadd.f32 1e-05, %v902_v29  ;;  %v949_v30 = vadd.f32 1e-05, %v917_v51  ;;  %v1144_v33 = vadd.f32 %v2898_v34, %v1106_v44  ;;  %v1046_v60 = vmul.f32 %v2880_v35, %v1008_v42 }
 0x1bc   : > { %1831 = vmatprep.mubr.bf16.mxu1 %v1180_v43  ;;  %v884_v1 = vpop.xlane.xlu1 %883  ;;  %v854_v20 = vpop.xlane.xlu0 %853  ;;  %v1145_v4 = vadd.f32 %v2898_v34, %v1107_v13  ;;  %v1083_v2 = vadd.f32 %v2886_v56, %v1045_v32  ;;  %v993_v58 = vmul.f32 %v2005_v9, %v2788_v28  ;;  %v994_v57 = vmul.f32 %v2007_v23, %v2793_v38 }
 0x1bd   : > { %2022 = vrsqrt.f32 %v934_v27  ;;  %v918_v52 = vmul.f32 0.0078125, %v884_v1  ;;  %v903_v18 = vmul.f32 0.0078125, %v854_v20  ;;  %v1084_v48 = vadd.f32 %v2886_v56, %v1046_v60 }
 0x1be   : > { %v2011_v41 = vpop.eup %2010  ;;  %2024 = vrsqrt.f32 %v949_v30  ;;  %v1173_v0 = vpack.c.bf16 %v1145_v4, %v1144_v33  ;;  %v1122_v6 = vmul.f32 %v2893_v61, %v1083_v2  ;;  %v1031_v54 = vmul.f32 %v2880_v35, %v993_v58 }
 0x1bf   : > { %v2013_v40 = vpop.eup %2012  ;;  %v950_v37 = vadd.f32 1e-05, %v918_v52  ;;  %v935_v62 = vadd.f32 1e-05, %v903_v18  ;;  %v1123_v55 = vmul.f32 %v2893_v61, %v1084_v48  ;;  %v1032_v28 = vmul.f32 %v2880_v35, %v994_v57 }
 0x1c0   : > { %1816 = vmatmul.mubr.bf16.gmra.mxu0 %v1173_v0  ;;  %v856_v38 = vpop.xlane.xlu1 %855  ;;  %v886_v9 = vpop.xlane.xlu0 %885  ;;  %v1160_v46 = vadd.f32 %v2898_v34, %v1122_v6  ;;  %v1069_v10 = vadd.f32 %v2886_v56, %v1031_v54  ;;  %v1009_v22 = vmul.f32 %v2009_v36, %v2798_v63  ;;  %v1010_v42 = vmul.f32 %v2011_v41, %v2803_v11 }
 0x1c1   : > { %2026 = vrsqrt.f32 %v950_v37  ;;  %v904_v29 = vmul.f32 0.0078125, %v856_v38  ;;  %v919_v51 = vmul.f32 0.0078125, %v886_v9  ;;  %v1161_v44 = vadd.f32 %v2898_v34, %v1123_v55 }
 0x1c2   : > { %v2015_v23 = vpop.eup %2014  ;;  %2028 = vrsqrt.f32 %v935_v62  ;;  %v1070_v43 = vadd.f32 %v2886_v56, %v1032_v28  ;;  %v1108_v13 = vmul.f32 %v2893_v61, %v1069_v10  ;;  %v1047_v32 = vmul.f32 %v2880_v35, %v1009_v22 }
 0x1c3   : > { %v2017_v27 = vpop.eup %2016  ;;  %v936_v30 = vadd.f32 1e-05, %v904_v29  ;;  %v951_v33 = vadd.f32 1e-05, %v919_v51  ;;  %v1181_v60 = vpack.c.bf16 %v1161_v44, %v1160_v46  ;;  %v1048_v63 = vmul.f32 %v2880_v35, %v1010_v42 }
 0x1c4   : > { %v888_v11 = vpop.xlane.xlu1 %887  ;;  %v1109_v36 = vmul.f32 %v2893_v61, %v1070_v43  ;;  %v1146_v1 = vadd.f32 %v2898_v34, %v1108_v13  ;;  %v1085_v20 = vadd.f32 %v2886_v56, %v1047_v32  ;;  %v995_v4 = vmul.f32 %v2013_v40, %v2808_v31 }
 0x1c5   : > { %2030 = vrsqrt.f32 %v936_v30  ;;  %1832 = vmatmul.mubr.bf16.gmra.mxu1 %v1181_v60  ;;  %v920_v2 = vmul.f32 0.0078125, %v888_v11  ;;  %v1086_v58 = vadd.f32 %v2886_v56, %v1048_v63  ;;  %v996_v57 = vmul.f32 %v2015_v23, %v2813_v50 }
 0x1c6   : > { %v2019_v52 = vpop.eup %2018  ;;  %2032 = vrsqrt.f32 %v951_v33  ;;  %v1147_v18 = vadd.f32 %v2898_v34, %v1109_v36  ;;  %v1124_v48 = vmul.f32 %v2893_v61, %v1085_v20  ;;  %v1033_v41 = vmul.f32 %v2880_v35, %v995_v4 }
 0x1c7   : > { %v2021_v0 = vpop.eup %2020  ;;  %v952_v6 = vadd.f32 1e-05, %v920_v2  ;;  %v1125_v54 = vmul.f32 %v2893_v61, %v1086_v58  ;;  %v1034_v31 = vmul.f32 %v2880_v35, %v996_v57  ;;  %v1011_v40 = vmul.f32 %v2017_v27, %v2818_v5 }
 0x1c8   : > { %v1174_v37 = vpack.c.bf16 %v1147_v18, %v1146_v1  ;;  %v1162_v62 = vadd.f32 %v2898_v34, %v1124_v48  ;;  %v1071_v50 = vadd.f32 %v2886_v56, %v1033_v41  ;;  %v1012_v55 = vmul.f32 %v2019_v52, %v2823_v45 }
 0x1c9   : > { %2034 = vrsqrt.f32 %v952_v6  ;;  %v1163_v28 = vadd.f32 %v2898_v34, %v1125_v54  ;;  %v1072_v38 = vadd.f32 %v2886_v56, %v1034_v31  ;;  %v1049_v9 = vmul.f32 %v2880_v35, %v1011_v40 }
 0x1ca   : > { %v2023_v46 = vpop.eup %2022  ;;  %1819 = vmatprep.mubr.bf16.mxu0 %v1174_v37  ;;  %v1110_v10 = vmul.f32 %v2893_v61, %v1071_v50  ;;  %v1050_v5 = vmul.f32 %v2880_v35, %v1012_v55  ;;  %v997_v22 = vmul.f32 %v2021_v0, %v2828_v49 }
 0x1cb   : > { %v2025_v42 = vpop.eup %2024  ;;  %v1182_v29 = vpack.c.bf16 %v1163_v28, %v1162_v62  ;;  %v1111_v51 = vmul.f32 %v2893_v61, %v1072_v38  ;;  %v1087_v45 = vadd.f32 %v2886_v56, %v1049_v9  ;;  %v998_v44 = vmul.f32 %v2023_v46, %v2833_v19 }
 0x1cc   : > { %v1088_v23 = vadd.f32 %v2886_v56, %v1050_v5  ;;  %v1035_v43 = vmul.f32 %v2880_v35, %v997_v22  ;;  %v1013_v13 = vmul.f32 %v2025_v42, %v2838_v24  ;;  %v1148_v32 = vadd.f32 %v2898_v34, %v1110_v10 }
 0x1cd   : > { %1835 = vmatprep.mubr.bf16.mxu1 %v1182_v29  ;;  %v1149_v27 = vadd.f32 %v2898_v34, %v1111_v51  ;;  %v1126_v49 = vmul.f32 %v2893_v61, %v1087_v45  ;;  %v1036_v30 = vmul.f32 %v2880_v35, %v998_v44 }
 0x1ce   : > { %v2027_v33 = vpop.eup %2026  ;;  %v1127_v60 = vmul.f32 %v2893_v61, %v1088_v23  ;;  %v1073_v19 = vadd.f32 %v2886_v56, %v1035_v43  ;;  %v1051_v63 = vmul.f32 %v2880_v35, %v1013_v13 }
 0x1cf   : > { %v2029_v11 = vpop.eup %2028  ;;  %v1175_v36 = vpack.c.bf16 %v1149_v27, %v1148_v32  ;;  %v1164_v24 = vadd.f32 %v2898_v34, %v1126_v49  ;;  %v1074_v1 = vadd.f32 %v2886_v56, %v1036_v30  ;;  %v1014_v20 = vmul.f32 %v2027_v33, %v2843_v14 }
 0x1d0   : > { %v1165_v4 = vadd.f32 %v2898_v34, %v1127_v60  ;;  %v1112_v2 = vmul.f32 %v2893_v61, %v1073_v19  ;;  %v1089_v58 = vadd.f32 %v2886_v56, %v1051_v63  ;;  %v999_v57 = vmul.f32 %v2029_v11, %v2848_v59 }
 0x1d1   : > { %1820 = vmatmul.mubr.bf16.gmra.mxu0 %v1175_v36  ;;  %v1113_v52 = vmul.f32 %v2893_v61, %v1074_v1  ;;  %v1052_v18 = vmul.f32 %v2880_v35, %v1014_v20 }
 0x1d2   : > { %v2031_v48 = vpop.eup %2030  ;;  %v1183_v41 = vpack.c.bf16 %v1165_v4, %v1164_v24  ;;  %v1128_v0 = vmul.f32 %v2893_v61, %v1089_v58  ;;  %v1037_v6 = vmul.f32 %v2880_v35, %v999_v57  ;;  %v1150_v54 = vadd.f32 %v2898_v34, %v1112_v2 }
 0x1d3   : > { %v2033_v14 = vpop.eup %2032  ;;  %v1151_v31 = vadd.f32 %v2898_v34, %v1113_v52  ;;  %v1090_v40 = vadd.f32 %v2886_v56, %v1052_v18  ;;  %v1000_v59 = vmul.f32 %v2031_v48, %v2853_v53 }
 0x1d4   : > { %1836 = vmatmul.mubr.bf16.gmra.mxu1 %v1183_v41  ;;  %v1075_v37 = vadd.f32 %v2886_v56, %v1037_v6  ;;  %v1015_v62 = vmul.f32 %v2033_v14, %v2858_v15  ;;  %v1166_v9 = vadd.f32 %v2898_v34, %v1128_v0 }
 0x1d5   : > { %v1176_v50 = vpack.c.bf16 %v1151_v31, %v1150_v54  ;;  %v1129_v55 = vmul.f32 %v2893_v61, %v1090_v40  ;;  %v1038_v28 = vmul.f32 %v2880_v35, %v1000_v59 }
 0x1d6   : > { %v2035_v38 = vpop.eup %2034  ;;  %v1053_v46 = vmul.f32 %v2880_v35, %v1015_v62  ;;  %v1114_v5 = vmul.f32 %v2893_v61, %v1075_v37 }
 0x1d7   : > { %1823 = vmatprep.mubr.bf16.mxu0 %v1176_v50  ;;  %v1167_v10 = vadd.f32 %v2898_v34, %v1129_v55  ;;  %v1076_v53 = vadd.f32 %v2886_v56, %v1038_v28  ;;  %v1016_v22 = vmul.f32 %v2035_v38, %v2863_v47 }
 0x1d8   : > { %v1091_v15 = vadd.f32 %v2886_v56, %v1053_v46  ;;  %v1152_v45 = vadd.f32 %v2898_v34, %v1114_v5 }
 0x1d9   : > { %v1184_v42 = vpack.c.bf16 %v1167_v10, %v1166_v9  ;;  %v1115_v29 = vmul.f32 %v2893_v61, %v1076_v53  ;;  %v1054_v51 = vmul.f32 %v2880_v35, %v1016_v22 }
 0x1da   : > { %v1130_v47 = vmul.f32 %v2893_v61, %v1091_v15 }
 0x1db   : > { %1839 = vmatprep.mubr.bf16.mxu1 %v1184_v42  ;;  %v1153_v44 = vadd.f32 %v2898_v34, %v1115_v29  ;;  %v1092_v23 = vadd.f32 %v2886_v56, %v1054_v51 }
 0x1dc   : > { %v1168_v32 = vadd.f32 %v2898_v34, %v1130_v47 }
 0x1dd   : > { %v1177_v43 = vpack.c.bf16 %v1153_v44, %v1152_v45  ;;  %v1131_v13 = vmul.f32 %v2893_v61, %v1092_v23 }
 0x1df   : > { %1824 = vmatmul.mubr.bf16.gmra.mxu0 %v1177_v43  ;;  %v1169_v35 = vadd.f32 %v2898_v34, %v1131_v13 }
 0x1e1   : > { %v1185_v27 = vpack.c.bf16 %v1169_v35, %v1168_v32 }
 0x1e3   : > { %1840 = vmatmul.mubr.bf16.gmra.mxu1 %v1185_v27 }
 0x1e4   : > { %2131 = shalt.err (!%p2128_p2)
}
 0x1e5   : > { %s2132_s21 = scalar_lea.hbm %s3065_s11, 4096  ;;  %s2136_s10 = scalar_lea.hbm %s3391_s22, 16384 }
 0x1e6   : > { %p2133_p6 = scmp.ne.s32.totalorder %s3065_s11, %s2132_s21  ;;  %p2137_p11 = scmp.lt.s32.totalorder %s3065_s11, %s3391_s22 }
 0x1e7   : > { %p2138_p10 = scmp.lt.s32.totalorder %s2136_s10, %s2132_s21 }
 0x1e8   : > { %p2134_p7 = pnand %p2133_p6, %p2404_p12 }
 0x1e9   : > { %p2139_p1 = por %p2138_p10, %p2137_p11 }
 0x1ea   : > { %p2135_p9 = pneg %p2134_p7 }
 0x1ec   : > { %p2140_p4 = pnand %p2139_p1, %p2135_p9 }
 0x1ee   : > { %2143 = shalt.err (!%p2140_p4)
}
 0x1ef   : > { %s2262_s18 = smov 128   ;;  %s2263_s16 = smov 8   ;;  %v3394_v29 = vld [vmem:[#allocation28_spill] sm:$0xff]  ;;  %v3396_v13 = vld [vmem:[#allocation25_spill] sm:$0xff]  ;;  %v3397_v27 = vld [vmem:[#allocation26_spill] sm:$0xff] }
 0x1f0   : > { %1868 = dma.vmem_to_hbm [thread:$0]  (%p2404_p12), %s3068_s7, 4096, %s3065_s11, %s1509_s12, %s2262_s18, %s2262_s18, %s2263_s16  }
 0x1f1   : > { %s3392_s17 = sld [smem:[#allocation48_spill]]  ;;  %s1504_s10 = scalar_lea.sflag [#allocation4], %s2457_s8 }
 0x1f2   : > { %s3393_s30 = sld [smem:[#allocation50_spill]]  ;;  %s2264_s28 = smov [#allocation8]  }
 0x1f3   : > { %s3416_s12 = sld [smem:[#allocation51_spill]]  ;;  %s2148_s25 = sshll.u32 %s2264_s28, 4  ;;  %s2149_s25 = int_to_ptr.vmem [resolvable:$false] %s2148_s25 }
 0x1f4   : > { %s2150_s4 = scalar_lea.vmem %s2149_s25, 8192 }
 0x1f7   : > { %s510_s27 = scalar_lea.vmem %s3392_s17, %s2871_s23  ;;  %s3117_s23 = scalar_lea.vmem [#allocation8], %s2460_s19 }
 0x1f8   : > { %v3103_v34 = vld [vmem:[%s3393_s30] ss:$0 sm:$0xff]  ;;  %s1524_s19 = sshll.u32 %s3117_s23, 4  ;;  %s3245_s19 = int_to_ptr.vmem [resolvable:$true] %s1524_s19 }
 0x1f9   : > { %v3105_v56 = vld [vmem:[%s510_s27] ss:$0 sm:$0xff]  ;;  %s3243_s24 = scalar_lea.hbm %s3416_s12, %s1765_s0  ;;  %s2144_s9 = scalar_lea.vmem %s3245_s19, 4096 }
 0x1fa   : > { %p2145_p8 = scmp.ne.s32.totalorder %s3245_s19, %s2144_s9  ;;  %p2151_p13 = scmp.lt.s32.totalorder %s3245_s19, %s2149_s25 }
 0x1fb   : > { %p2152_p0 = scmp.lt.s32.totalorder %s2150_s4, %s2144_s9 }
 0x1fc   : > { %p2146_p3 = pnand %p2145_p8, %p2404_p12 }
 0x1fd   : > { %p2153_p2 = por %p2152_p0, %p2151_p13 }
 0x1fe   : > { %p2147_p5 = pneg %p2146_p3 }
 0x200   : > { %p2154_p6 = pnand %p2153_p2, %p2147_p5 }
 0x270   : > { %v1813_v61 = vpop.f32.mrf.mxu0 }
 0x271   : > { %v1283_v49 = vadd.f32 %v1813_v61, %v3103_v34 }
 0x272   : > { %v1274_v30 = vpop.f32.mrf.mxu0 }
 0x273   : > { %v1409_v33 = vmul.f32 %v3105_v56, %v1283_v49  ;;  %v1275_v60 = vadd.f32 %v3103_v34, %v1274_v30  ;;  %v1829_v19 = vpop.f32.mrf.mxu1 }
 0x274   : > { %v1814_v63 = vpop.f32.mrf.mxu0  ;;  %v1347_v11 = vadd.f32 %v1829_v19, %v3103_v34 }
 0x275   : > { %v1441_v36 = vadd.f32 %v1409_v33, %v2513_v16  ;;  %v1407_v24 = vmul.f32 %v3105_v56, %v1275_v60  ;;  %v1286_v1 = vadd.f32 %v1814_v63, %v3103_v34  ;;  %v1338_v20 = vpop.f32.mrf.mxu1  ;;  %v3398_v33 = vld [vmem:[#allocation30_spill] sm:$0xff]  ;;  %v3399_v63 = vld [vmem:[#allocation27_spill] sm:$0xff] }
 0x276   : > { %v1425_v4 = vmul.f32 %v3105_v56, %v1347_v11  ;;  %v1277_v2 = vpop.f32.mrf.mxu0  ;;  %v1339_v58 = vadd.f32 %v3103_v34, %v1338_v20 }
 0x277   : > { %1473 = vst [vmem:[%s3117_s23 + $0x10] sm:$0xff] %v1441_v36  ;;  %v1439_v57 = vadd.f32 %v1407_v24, %v2485_v3  ;;  %v1410_v16 = vmul.f32 %v3105_v56, %v1286_v1  ;;  %v1278_v52 = vadd.f32 %v3103_v34, %v1277_v2  ;;  %v1830_v18 = vpop.f32.mrf.mxu1 }
 0x278   : > { %v1457_v48 = vadd.f32 %v1425_v4, %v2522_v21  ;;  %v1423_v41 = vmul.f32 %v3105_v56, %v1339_v58  ;;  %v1350_v0 = vadd.f32 %v1830_v18, %v3103_v34 }
 0x279   : > { %1471 = vst [vmem:[%s3117_s23] sm:$0xff] %v1439_v57  ;;  %v1442_v6 = vadd.f32 %v1410_v16, %v2515_v17  ;;  %v1408_v3 = vmul.f32 %v3105_v56, %v1278_v52  ;;  %v1341_v14 = vpop.f32.mrf.mxu1  ;;  %v3400_v16 = vld [vmem:[#allocation35_spill] sm:$0xff] }
 0x27a   : > { %1489 = vst [vmem:[%s3117_s23 + $0x90] sm:$0xff] %v1457_v48  ;;  %v1455_v54 = vadd.f32 %v1423_v41, %v2490_v7  ;;  %v1426_v31 = vmul.f32 %v3105_v56, %v1350_v0  ;;  %v1342_v21 = vadd.f32 %v3103_v34, %v1341_v14  ;;  %v3401_v14 = vld [vmem:[#allocation31_spill] sm:$0xff] }
 0x27b   : > { %1474 = vst [vmem:[%s3117_s23 + $0x18] sm:$0xff] %v1442_v6  ;;  %v1440_v40 = vadd.f32 %v1408_v3, %v2492_v8 }
 0x27c   : > { %1487 = vst [vmem:[%s3117_s23 + $0x80] sm:$0xff] %v1455_v54  ;;  %v1458_v59 = vadd.f32 %v1426_v31, %v2531_v25  ;;  %v1424_v37 = vmul.f32 %v3105_v56, %v1342_v21 }
 0x27d   : > { %1472 = vst [vmem:[%s3117_s23 + $0x8] sm:$0xff] %v1440_v40 }
 0x27e   : > { %1490 = vst [vmem:[%s3117_s23 + $0x98] sm:$0xff] %v1458_v59  ;;  %v1456_v17 = vadd.f32 %v1424_v37, %v2503_v12  ;;  %v3402_v59 = vld [vmem:[#allocation37_spill] sm:$0xff] }
 0x280   : > { %1488 = vst [vmem:[%s3117_s23 + $0x88] sm:$0xff] %v1456_v17  ;;  %v1817_v62 = vpop.f32.mrf.mxu0 }
 0x281   : > { %v1299_v7 = vadd.f32 %v1817_v62, %v3103_v34 }
 0x282   : > { %v1290_v50 = vpop.f32.mrf.mxu0 }
 0x283   : > { %v1413_v55 = vmul.f32 %v3105_v56, %v1299_v7  ;;  %v1291_v8 = vadd.f32 %v3103_v34, %v1290_v50  ;;  %v3403_v7 = vld [vmem:[#allocation36_spill] sm:$0xff] }
 0x284   : > { %v1818_v28 = vpop.f32.mrf.mxu0 }
 0x285   : > { %v1445_v25 = vadd.f32 %v1413_v55, %v2560_v39  ;;  %v1411_v38 = vmul.f32 %v3105_v56, %v1291_v8  ;;  %v1302_v9 = vadd.f32 %v1818_v28, %v3103_v34  ;;  %v1833_v46 = vpop.f32.mrf.mxu1  ;;  %v3404_v28 = vld [vmem:[#allocation33_spill] sm:$0xff] }
 0x286   : > { %v1363_v12 = vadd.f32 %v1833_v46, %v3103_v34  ;;  %v1293_v10 = vpop.f32.mrf.mxu0  ;;  %v3405_v46 = vld [vmem:[#allocation32_spill] sm:$0xff] }
 0x287   : > { %1477 = vst [vmem:[%s3117_s23 + $0x30] sm:$0xff] %v1445_v25  ;;  %v1443_v53 = vadd.f32 %v1411_v38, %v2533_v26  ;;  %v1414_v5 = vmul.f32 %v3105_v56, %v1302_v9  ;;  %v1294_v22 = vadd.f32 %v3103_v34, %v1293_v10  ;;  %v1354_v15 = vpop.f32.mrf.mxu1  ;;  %v3395_v26 = vld [vmem:[#allocation29_spill] sm:$0xff]  ;;  %v3406_v10 = vld [vmem:[#allocation38_spill] sm:$0xff] }
 0x288   : > { %v1429_v39 = vmul.f32 %v3105_v56, %v1363_v12  ;;  %v1355_v42 = vadd.f32 %v3103_v34, %v1354_v15 }
 0x289   : > { %1475 = vst [vmem:[%s3117_s23 + $0x20] sm:$0xff] %v1443_v53  ;;  %v1446_v51 = vadd.f32 %v1414_v5, %v3394_v29  ;;  %v1412_v45 = vmul.f32 %v3105_v56, %v1294_v22  ;;  %v1834_v44 = vpop.f32.mrf.mxu1  ;;  %v3407_v22 = vld [vmem:[#allocation34_spill] sm:$0xff] }
 0x28a   : > { %v1461_v23 = vadd.f32 %v1429_v39, %v3395_v26  ;;  %v1427_v47 = vmul.f32 %v3105_v56, %v1355_v42  ;;  %v1366_v43 = vadd.f32 %v1834_v44, %v3103_v34 }
 0x28b   : > { %1478 = vst [vmem:[%s3117_s23 + $0x38] sm:$0xff] %v1446_v51  ;;  %v1444_v32 = vadd.f32 %v1412_v45, %v3396_v13  ;;  %v1357_v35 = vpop.f32.mrf.mxu1 }
 0x28c   : > { %1493 = vst [vmem:[%s3117_s23 + $0xb0] sm:$0xff] %v1461_v23  ;;  %v1459_v61 = vadd.f32 %v1427_v47, %v3397_v27  ;;  %v1430_v49 = vmul.f32 %v3105_v56, %v1366_v43  ;;  %v1358_v30 = vadd.f32 %v3103_v34, %v1357_v35  ;;  %v3408_v23 = vld [vmem:[#allocation43_spill] sm:$0xff] }
 0x28d   : > { %1476 = vst [vmem:[%s3117_s23 + $0x28] sm:$0xff] %v1444_v32 }
 0x28e   : > { %1491 = vst [vmem:[%s3117_s23 + $0xa0] sm:$0xff] %v1459_v61  ;;  %v1462_v60 = vadd.f32 %v1430_v49, %v3398_v33  ;;  %v1428_v19 = vmul.f32 %v3105_v56, %v1358_v30  ;;  %v3409_v61 = vld [vmem:[#allocation39_spill] sm:$0xff] }
 0x290   : > { %1494 = vst [vmem:[%s3117_s23 + $0xb8] sm:$0xff] %v1462_v60  ;;  %v1460_v11 = vadd.f32 %v1428_v19, %v3399_v63 }
 0x291   : > { %v1821_v36 = vpop.f32.mrf.mxu0 }
 0x292   : > { %1492 = vst [vmem:[%s3117_s23 + $0xa8] sm:$0xff] %v1460_v11  ;;  %v1315_v24 = vadd.f32 %v1821_v36, %v3103_v34  ;;  %v3410_v11 = vld [vmem:[#allocation44_spill] sm:$0xff] }
 0x293   : > { %v1306_v1 = vpop.f32.mrf.mxu0 }
 0x294   : > { %v1417_v20 = vmul.f32 %v3105_v56, %v1315_v24  ;;  %v1307_v4 = vadd.f32 %v3103_v34, %v1306_v1  ;;  %v1837_v2 = vpop.f32.mrf.mxu1  ;;  %v3411_v24 = vld [vmem:[#allocation45_spill] sm:$0xff] }
 0x295   : > { %v1822_v58 = vpop.f32.mrf.mxu0  ;;  %v1379_v57 = vadd.f32 %v1837_v2, %v3103_v34 }
 0x296   : > { %v1449_v52 = vadd.f32 %v1417_v20, %v3400_v16  ;;  %v1415_v18 = vmul.f32 %v3105_v56, %v1307_v4  ;;  %v1318_v48 = vadd.f32 %v1822_v58, %v3103_v34  ;;  %v1370_v41 = vpop.f32.mrf.mxu1 }
 0x297   : > { %v1433_v0 = vmul.f32 %v3105_v56, %v1379_v57  ;;  %v1309_v6 = vpop.f32.mrf.mxu0  ;;  %v1371_v3 = vadd.f32 %v3103_v34, %v1370_v41  ;;  %v3412_v57 = vld [vmem:[#allocation40_spill] sm:$0xff] }
 0x298   : > { %1481 = vst [vmem:[%s3117_s23 + $0x50] sm:$0xff] %v1449_v52  ;;  %v1447_v54 = vadd.f32 %v1415_v18, %v3401_v14  ;;  %v1418_v31 = vmul.f32 %v3105_v56, %v1318_v48  ;;  %v1310_v21 = vadd.f32 %v3103_v34, %v1309_v6  ;;  %v1838_v40 = vpop.f32.mrf.mxu1  ;;  %v3413_v48 = vld [vmem:[#allocation41_spill] sm:$0xff]  ;;  %v3415_v14 = vld [vmem:[#allocation42_spill] sm:$0xff] }
 0x299   : > { %v1465_v37 = vadd.f32 %v1433_v0, %v3402_v59  ;;  %v1431_v17 = vmul.f32 %v3105_v56, %v1371_v3  ;;  %v1382_v62 = vadd.f32 %v1838_v40, %v3103_v34  ;;  %v3414_v0 = vld [vmem:[#allocation46_spill] sm:$0xff] }
 0x29a   : > { %1479 = vst [vmem:[%s3117_s23 + $0x40] sm:$0xff] %v1447_v54  ;;  %v1450_v50 = vadd.f32 %v1418_v31, %v3403_v7  ;;  %v1416_v55 = vmul.f32 %v3105_v56, %v1310_v21  ;;  %v1373_v8 = vpop.f32.mrf.mxu1 }
 0x29b   : > { %1497 = vst [vmem:[%s3117_s23 + $0xd0] sm:$0xff] %v1465_v37  ;;  %v1463_v25 = vadd.f32 %v1431_v17, %v3404_v28  ;;  %v1434_v38 = vmul.f32 %v3105_v56, %v1382_v62  ;;  %v1374_v9 = vadd.f32 %v3103_v34, %v1373_v8 }
 0x29c   : > { %1482 = vst [vmem:[%s3117_s23 + $0x58] sm:$0xff] %v1450_v50  ;;  %v1448_v12 = vadd.f32 %v1416_v55, %v3405_v46 }
 0x29d   : > { %1495 = vst [vmem:[%s3117_s23 + $0xc0] sm:$0xff] %v1463_v25  ;;  %v1466_v53 = vadd.f32 %v1434_v38, %v3406_v10  ;;  %v1432_v5 = vmul.f32 %v3105_v56, %v1374_v9 }
 0x29e   : > { %1480 = vst [vmem:[%s3117_s23 + $0x48] sm:$0xff] %v1448_v12 }
 0x29f   : > { %1498 = vst [vmem:[%s3117_s23 + $0xd8] sm:$0xff] %v1466_v53  ;;  %v1464_v15 = vadd.f32 %v1432_v5, %v3407_v22  ;;  %v1825_v39 = vpop.f32.mrf.mxu0 }
 0x2a0   : > { %v1331_v42 = vadd.f32 %v1825_v39, %v3103_v34 }
 0x2a1   : > { %1496 = vst [vmem:[%s3117_s23 + $0xc8] sm:$0xff] %v1464_v15  ;;  %v1322_v29 = vpop.f32.mrf.mxu0 }
 0x2a2   : > { %v1421_v51 = vmul.f32 %v3105_v56, %v1331_v42  ;;  %v1323_v45 = vadd.f32 %v3103_v34, %v1322_v29 }
 0x2a3   : > { %v1826_v44 = vpop.f32.mrf.mxu0  ;;  %v1841_v26 = vpop.f32.mrf.mxu1 }
 0x2a4   : > { %v1453_v47 = vadd.f32 %v1421_v51, %v3408_v23  ;;  %v1419_v43 = vmul.f32 %v3105_v56, %v1323_v45  ;;  %v1334_v13 = vadd.f32 %v1826_v44, %v3103_v34  ;;  %v1395_v32 = vadd.f32 %v1841_v26, %v3103_v34 }
 0x2a5   : > { %v1325_v35 = vpop.f32.mrf.mxu0  ;;  %v1386_v27 = vpop.f32.mrf.mxu1 }
 0x2a6   : > { %1485 = vst [vmem:[%s3117_s23 + $0x70] sm:$0xff] %v1453_v47  ;;  %v1451_v49 = vadd.f32 %v1419_v43, %v3409_v61  ;;  %v1422_v30 = vmul.f32 %v3105_v56, %v1334_v13  ;;  %v1437_v33 = vmul.f32 %v3105_v56, %v1395_v32  ;;  %v1326_v60 = vadd.f32 %v3103_v34, %v1325_v35 }
 0x2a7   : > { %v1387_v19 = vadd.f32 %v3103_v34, %v1386_v27  ;;  %v1842_v63 = vpop.f32.mrf.mxu1 }
 0x2a8   : > { %1483 = vst [vmem:[%s3117_s23 + $0x60] sm:$0xff] %v1451_v49  ;;  %v1454_v36 = vadd.f32 %v1422_v30, %v3410_v11  ;;  %v1469_v1 = vadd.f32 %v1437_v33, %v3411_v24  ;;  %v1420_v20 = vmul.f32 %v3105_v56, %v1326_v60  ;;  %v1398_v4 = vadd.f32 %v1842_v63, %v3103_v34 }
 0x2a9   : > { %v1435_v2 = vmul.f32 %v3105_v56, %v1387_v19  ;;  %v1389_v58 = vpop.f32.mrf.mxu1 }
 0x2aa   : > { %1486 = vst [vmem:[%s3117_s23 + $0x78] sm:$0xff] %v1454_v36  ;;  %1501 = vst [vmem:[%s3117_s23 + $0xf0] sm:$0xff] %v1469_v1  ;;  %v1452_v16 = vadd.f32 %v1420_v20, %v3412_v57  ;;  %v1438_v52 = vmul.f32 %v3105_v56, %v1398_v4  ;;  %v1390_v18 = vadd.f32 %v3103_v34, %v1389_v58 }
 0x2ab   : > { %v1467_v41 = vadd.f32 %v1435_v2, %v3413_v48 }
 0x2ac   : > { %1484 = vst [vmem:[%s3117_s23 + $0x68] sm:$0xff] %v1452_v16  ;;  %v1470_v6 = vadd.f32 %v1438_v52, %v3414_v0  ;;  %v1436_v3 = vmul.f32 %v3105_v56, %v1390_v18 }
 0x2ad   : > { %1499 = vst [vmem:[%s3117_s23 + $0xe0] sm:$0xff] %v1467_v41 }
 0x2ae   : > { %1502 = vst [vmem:[%s3117_s23 + $0xf8] sm:$0xff] %v1470_v6  ;;  %v1468_v54 = vadd.f32 %v1436_v3, %v3415_v14 }
 0x2b0   : > { %1500 = vst [vmem:[%s3117_s23 + $0xe8] sm:$0xff] %v1468_v54 }
 0x2b1   : > { %2157 = shalt.err (!%p2154_p6)
}
 0x2b2   : > { %s2158_s0 = scalar_lea.hbm %s3243_s24, 4096  ;;  %s2162_s17 = scalar_lea.hbm %s3416_s12, 16384 }
 0x2b3   : > { %p2159_p7 = scmp.ne.s32.totalorder %s3243_s24, %s2158_s0  ;;  %p2163_p10 = scmp.lt.s32.totalorder %s3243_s24, %s3416_s12 }
 0x2b4   : > { %p2164_p1 = scmp.lt.s32.totalorder %s2162_s17, %s2158_s0 }
 0x2b5   : > { %p2160_p9 = pnand %p2159_p7, %p2404_p12 }
 0x2b6   : > { %p2165_p4 = por %p2164_p1, %p2163_p10 }
 0x2b7   : > { %p2161_p11 = pneg %p2160_p9 }
 0x2b9   : > { %p2166_p8 = pnand %p2165_p4, %p2161_p11 }
 0x2bb   : > { %2169 = shalt.err (!%p2166_p8)
}
 0x2bc   : > { %1867 = dma.vmem_to_hbm [thread:$0]  (%p2404_p12), %s3245_s19, 4096, %s3243_s24, %s1504_s10, %s2262_s18, %s2262_s18, %s2263_s16  }
 0x2bd PF: > { %s3417_s21 = sld [smem:[#allocation16_spill]]  ;;  %p1892_p3 = scmp.ge.s32.totalorder %s2252_s20, 2 }
 0x2be   : > { %s3418_s30 = sld [smem:[#allocation20_spill]] }
 0x2c3   : > { %s1557_s23 = sand.u32 1, %s3417_s21  }
 0x2c4   : > { %p3419_p5 = scmp.ne.s32.totalorder %s3418_s30, 0  ;;  %s1558_s11 = scalar_lea.sflag [#allocation4], %s1557_s23 }
 0x2c6   : > { %p1883_p13 = pnand %p1892_p3, %p3419_p5 }
 0x2c8   : > { %p1884_p0 = pneg %p1883_p13 }
 0x2ca   : > { %2215 = dma.done.wait (%p1884_p0), %s1558_s11, 4096  }
 0x2cb   : > { %2217 = vsyncadd (%p1884_p0), %s1558_s11, 4294963200  ;;  %s1567_s7 = scalar_lea.sflag [#allocation10], %s1557_s23 }
 0x2cc   : > { %2219 = dma.done.wait (%p1884_p0), %s1567_s7, 4096  }
 0x2cd   : > { %2221 = vsyncadd (%p1884_p0), %s1567_s7, 4294963200  ;;  %s33_s20 = sadd.s32 1, %s2252_s20   ;;  %s3420_s18 = sld [smem:[#allocation24_spill]] }
 0x2ce   : > { %p30_p2 = scmp.ge.s32.totalorder %s33_s20, 6   ;;  %s3421_s16 = sld [smem:[#allocation18_spill]] }
 0x2cf   : > { %s3422_s17 = sld [smem:[#allocation19_spill]]  ;;  %s3425_s13 = smov %s2228_s14 }
 0x2d0   : > { %s3423_s19 = sld [smem:[#allocation21_spill]]  ;;  %s3426_s14 = smov %s2232_s15 }
 0x2d1   : > { %s3424_s24 = sld [smem:[#allocation23_spill]] }
 0x2d3   : > { %s3427_s15 = smov %s3420_s18  ;;  %32 = sbr.rel (!%p30_p2) target bundleno = 18 (0x12), region = 144 }
 0x2d6   : > { %s3428_s18 = smov %s3423_s19 }
 0x2d7   : > { %s3429_s19 = smov %s3424_s24 }
 0x2d8   :  { %1572 = vsyncpa [#allocation3], 1 }
 0x2d9   :  { %1574 = vsyncpa [#allocation3 + $0x1], 1 }
 0x2da   :  { %1575 = vsyncpa [#allocation6], 1 }
 0x2db   :  { %1577 = vsyncpa [#allocation6 + $0x1], 1 }
 0x2dc   :  { %1578 = vsyncpa [#allocation4], 1 }
 0x2dd   :  { %1580 = vsyncpa [#allocation4 + $0x1], 1 }
 0x2de   :  { %1581 = vsyncpa [#allocation10], 1 }
 0x2df   :  { %1583 = vsyncpa [#allocation10 + $0x1], 1 }

</bundles_post_ra>
